<compile_context>
chip_gen: v5e
topology: v5e:2x2
jax: 0.10.0
libtpu: 0.0.40
codegen_flags: <defaults>
</compile_context>

<pallas_src>
from functools import partial

import jax
import jax.numpy as jnp
import numpy as np
from jax import lax
from jax.experimental import pallas as pl
from jax.experimental.pallas import tpu as pltpu


def _round_up(x, m):
    return ((x + m - 1) // m) * m


def _default_num_batch_blocks(b_pad):
    """nb = 2 only on chips with 2 TensorCores per device; otherwise 1."""
    if b_pad % 16 != 0:
        return 1
    try:
        kind = jax.devices()[0].device_kind.lower()
    except Exception:
        return 1
    # v3/v4/v5p (megacore) and v7x expose 2 TensorCores per device; v5e/v6e are
    # single-TC, where splitting the batch only serializes extra recurrences.
    if any(tag in kind for tag in ("v7", "v4", "v3", "v5p")):
        return 2
    return 1


def lstm_chunk_kernel(gx_ref, wh_ref, w1_ref, b1_ref, w2r_ref, b2_ref,
                      y_ref, hn_ref, cn_ref,
                      h_st, c_st, h_hist,
                      *, seq_len, s_pad, t_chunk, matmul_dtype):
    """One grid step == one (batch_block, time_chunk) tile of the LSTM + head."""
    c_idx = pl.program_id(1)               # time-chunk index (innermost, "arbitrary")
    b_blk, H = h_st.shape

    @pl.when(c_idx == 0)
    def _():
        h_st[...] = jnp.zeros_like(h_st)
        c_st[...] = jnp.zeros_like(c_st)

    wh = wh_ref[...]                        # (H, 4H), hoisted out of the inner loop
    t0 = c_idx * t_chunk                    # first global timestep of this chunk

    def make_step(masked):
        def step(t, carry):
            h, c = carry                    # f32 (b_blk, H) register-resident state
            # gates_x precomputed outside the kernel; only h @ W_hh^T is serial.
            # bf16->f32 promotion of gx is folded into this add.
            gates = gx_ref[t] + jnp.dot(h.astype(matmul_dtype), wh,
                                        preferred_element_type=jnp.float32)  # (b_blk, 4H)
            # One full-width sigmoid covers the i/f/o lanes in a single EUP push.
            sig = jax.nn.sigmoid(gates)
            i_g = sig[:, 0:H]
            f_g = sig[:, H:2 * H]
            o_g = sig[:, 3 * H:4 * H]
            g_g = jnp.tanh(gates[:, 2 * H:3 * H])
            c_new = f_g * c + i_g * g_g
            h_new = o_g * jnp.tanh(c_new)
            if masked:
                # Only the final partial chunk pays for the hold-state selects.
                valid = (t0 + t) < seq_len
                h_new = jnp.where(valid, h_new, h)
                c_new = jnp.where(valid, c_new, c)
            h_hist[t] = h_new.astype(h_hist.dtype)   # bf16 stash for the batched head
            return (h_new, c_new)
        return step

    def run_chunk(masked):
        h, c = lax.fori_loop(0, t_chunk, make_step(masked),
                             (h_st[...], c_st[...]), unroll=8)
        h_st[...] = h
        c_st[...] = c

    if s_pad == seq_len:
        run_chunk(False)                    # no padded timesteps anywhere
    else:
        is_full = (t0 + t_chunk) <= seq_len

        @pl.when(is_full)
        def _():
            run_chunk(False)

        @pl.when(jnp.logical_not(is_full))
        def _():
            run_chunk(True)

    # Batched MLP head for the whole chunk (off the serial critical path):
    #   Linear(H,H) as one (T*B, H) x (H, H) MXU matmul (bf16 in, f32 acc), tanh,
    #   then the (H -> 1) projection as a broadcast-multiply + lane reduction.
    hh = h_hist[...].reshape(t_chunk * b_blk, H)
    hid = jnp.tanh(jnp.dot(hh, w1_ref[...],
                           preferred_element_type=jnp.float32) + b1_ref[...])
    hid3 = hid.reshape(t_chunk, b_blk, H)
    y_tb = jnp.sum(hid3 * w2r_ref[...], axis=-1) + b2_ref[...]          # (T, B)
    y_ref[...] = y_tb.T                                                  # (B, T): lane-dense

    @pl.when(c_idx == pl.num_programs(1) - 1)
    def _():
        hn_ref[...] = h_st[...]
        cn_ref[...] = c_st[...]


def run_lstm_head(gx, wh, w1, b1, w2row, b2, *, seq_len, t_chunk, matmul_dtype,
                  num_batch_blocks=None):
    """gx: (S_pad, B_pad, 4H) pre-projected gate inputs (time-major, padded)."""
    S_pad, B_pad, G = gx.shape
    H = wh.shape[0]
    assert G == 4 * H
    assert S_pad % t_chunk == 0
    nc = S_pad // t_chunk
    assert nc == 1 or t_chunk % 128 == 0    # lane-dense y blocks when multi-chunk

    if num_batch_blocks is None:
        num_batch_blocks = _default_num_batch_blocks(B_pad)
    nb = max(1, int(num_batch_blocks))
    if B_pad % (8 * nb) != 0:
        nb = 1                              # fall back to a single block
    b_blk = B_pad // nb

    full = lambda shape: pl.BlockSpec(shape, lambda b, c, _s=shape: (0,) * len(_s))
    grid_spec = pltpu.PrefetchScalarGridSpec(
        num_scalar_prefetch=0,
        grid=(nb, nc),
        in_specs=[
            pl.BlockSpec((t_chunk, b_blk, 4 * H), lambda b, c: (c, b, 0)),  # gates_x slab
            full((H, 4 * H)),        # W_hh^T
            full((H, H)),            # W1^T
            full((1, H)),            # b1
            full((1, H)),            # W2 (row)
            full((1, 1)),            # b2
        ],
        out_specs=[
            pl.BlockSpec((b_blk, t_chunk), lambda b, c: (b, c)),   # y: lane-dense (B, T)
            pl.BlockSpec((b_blk, H), lambda b, c: (b, 0)),         # h_n (resident over c)
            pl.BlockSpec((b_blk, H), lambda b, c: (b, 0)),         # c_n (resident over c)
        ],
        scratch_shapes=[
            pltpu.VMEM((b_blk, H), jnp.float32),                   # h state (f32)
            pltpu.VMEM((b_blk, H), jnp.float32),                   # c state (f32)
            pltpu.VMEM((t_chunk, b_blk, H), matmul_dtype),         # hidden-state history
        ],
    )
    kernel = partial(lstm_chunk_kernel, seq_len=seq_len, s_pad=S_pad,
                     t_chunk=t_chunk, matmul_dtype=matmul_dtype)
    y, hn, cn = pl.pallas_call(
        kernel,
        out_shape=(
            jax.ShapeDtypeStruct((B_pad, S_pad), jnp.float32),
            jax.ShapeDtypeStruct((B_pad, H), jnp.float32),
            jax.ShapeDtypeStruct((B_pad, H), jnp.float32),
        ),
        grid_spec=grid_spec,
        compiler_params=pltpu.CompilerParams(
            dimension_semantics=("parallel", "arbitrary"),
            # 2 x (t_chunk*b_blk*4H) gx buffers + h_hist stay ~1-2 MiB at these
            # shapes; 32 MiB is safe on every generation (v7x has 64 MiB total).
            vmem_limit_bytes=32 * 1024 * 1024),
    )(gx, wh, w1, b1, w2row, b2)
    return y, hn, cn


def feed_back_lstm_forward(params, input_ids, labels, pad_id, target_range,
                           *, t_chunk=256, matmul_dtype=jnp.bfloat16,
                           num_batch_blocks=None):
    """Plain-JAX glue reproducing feedBackLSTM.forward; the recurrence runs in Pallas."""
    B, S = input_ids.shape
    H = params["wh"].shape[0]

    # Feature construction (cheap, XLA).
    labels_oh = jax.nn.one_hot(labels, target_range, dtype=jnp.float32)          # (B, S, R)
    past = jnp.concatenate(
        [jnp.zeros((B, 1, target_range), jnp.float32), labels_oh[:, :-1]], axis=1)
    past = jnp.where((input_ids == pad_id)[:, :, None], 0.0, past)
    # TODO(synk): training-mode Bernoulli dropout (p=0.5) not applied; inference semantics.
    emb = jnp.take(params["emb"], input_ids, axis=0)                              # (B, S, E)
    x = jnp.concatenate([past, emb], axis=2).astype(jnp.float32)                  # (B, S, D)

    # Hoisted input projection: one big MXU-friendly matmul (f32 accumulation).
    gx = jnp.einsum("bsd,dg->bsg", x, params["wx"]) + params["b"]                 # (B, S, 4H)

    # Effective chunking: short sequences collapse to a single exact chunk so no
    # padded timesteps are executed; longer sequences use 128-aligned chunks.
    if S <= t_chunk:
        t_eff = _round_up(S, 8)
        S_pad = t_eff
    else:
        t_eff = _round_up(t_chunk, 128)
        S_pad = _round_up(S, t_eff)
    B_pad = _round_up(max(B, 8), 8)

    # Time-major layout; the streamed gx slab is cast to matmul_dtype (bf16 by
    # default) AFTER the f32 accumulation above.
    gx = jnp.transpose(gx, (1, 0, 2))                                             # (S, B, 4H)
    gx = jnp.pad(gx, ((0, S_pad - S), (0, B_pad - B), (0, 0))).astype(matmul_dtype)

    y_pad, hn_pad, cn_pad = run_lstm_head(
        gx,
        params["wh"].astype(matmul_dtype),
        params["w1t"].astype(matmul_dtype),
        params["b1"],
        params["w2row"].astype(matmul_dtype),
        params["b2"],
        seq_len=S, t_chunk=t_eff, matmul_dtype=matmul_dtype,
        num_batch_blocks=num_batch_blocks)

    y = y_pad[:B, :S]                                                             # (B, S)
    hn = hn_pad[:B]
    cn = cn_pad[:B]
    return y, (hn[None], cn[None])                                                # (1, B, H)


def reference_forward(params, input_ids, labels, pad_id, target_range):
    """Pure-JAX reference (lax.scan) for verification."""
    B, S = input_ids.shape
    labels_oh = jax.nn.one_hot(labels, target_range, dtype=jnp.float32)
    past = jnp.concatenate(
        [jnp.zeros((B, 1, target_range), jnp.float32), labels_oh[:, :-1]], axis=1)
    past = jnp.where((input_ids == pad_id)[:, :, None], 0.0, past)
    emb = jnp.take(params["emb"], input_ids, axis=0)
    x = jnp.concatenate([past, emb], axis=2)
    x_sbd = jnp.transpose(x, (1, 0, 2)).astype(jnp.float32)
    H = params["wh"].shape[0]

    def step(carry, x_t):
        h, c = carry
        gates = x_t @ params["wx"] + h @ params["wh"] + params["b"]
        i_g = jax.nn.sigmoid(gates[:, 0:H])
        f_g = jax.nn.sigmoid(gates[:, H:2 * H])
        g_g = jnp.tanh(gates[:, 2 * H:3 * H])
        o_g = jax.nn.sigmoid(gates[:, 3 * H:4 * H])
        c = f_g * c + i_g * g_g
        h = o_g * jnp.tanh(c)
        hid = jnp.tanh(h @ params["w1t"] + params["b1"])
        y = hid @ params["w2row"].T + params["b2"]
        return (h, c), y[:, 0]

    (h, c), ys = lax.scan(step, (jnp.zeros((B, H)), jnp.zeros((B, H))), x_sbd)
    return jnp.transpose(ys, (1, 0)), (h[None], c[None])


def init_params(key, vocab_size, emb_dim, target_range, lstm_dim):
    D = emb_dim + target_range
    H = lstm_dim
    ks = jax.random.split(key, 8)
    scale = 0.1
    emb = scale * jax.random.normal(ks[0], (vocab_size, emb_dim), jnp.float32)
    emb = emb.at[0].set(0.0)  # padding_idx=0
    # PyTorch LSTM weights (4H, D)/(4H, H), stored pre-transposed for the kernel.
    w_ih = scale * jax.random.normal(ks[1], (4 * H, D), jnp.float32)
    w_hh = scale * jax.random.normal(ks[2], (4 * H, H), jnp.float32)
    b_ih = scale * jax.random.normal(ks[3], (4 * H,), jnp.float32)
    b_hh = scale * jax.random.normal(ks[4], (4 * H,), jnp.float32)
    w1 = scale * jax.random.normal(ks[5], (H, H), jnp.float32)
    b1 = scale * jax.random.normal(ks[6], (H,), jnp.float32)
    w2 = scale * jax.random.normal(ks[7], (1, H), jnp.float32)   # Linear(H, 1).weight
    b2 = jnp.zeros((1,), jnp.float32)
    return {
        "emb": emb,
        "wx": w_ih.T,                      # (D, 4H)
        "wh": w_hh.T,                      # (H, 4H)
        "b": (b_ih + b_hh)[None, :],       # (1, 4H)
        "w1t": w1.T,                       # (H, H)
        "b1": b1[None, :],                 # (1, H)
        "w2row": w2,                       # (1, H)
        "b2": b2[None, :],                 # (1, 1)
    }


if __name__ == "__main__":
    vocab_size, emb_dim, target_range, lstm_dim = 50, 100, 4, 32  # 4*H = 128 (lane-friendly)
    pad_id = 0

    key = jax.random.PRNGKey(0)
    kp, ki, kl, ki2, kl2, ki3, kl3 = jax.random.split(key, 7)
    params = init_params(kp, vocab_size, emb_dim, target_range, lstm_dim)

    # --- Test 1: module-sized shapes (B=2, S=8), f32 path, single exact chunk ---
    B, S = 2, 8
    input_ids = jax.random.randint(ki, (B, S), 0, vocab_size, dtype=jnp.int32)
    input_ids = input_ids.at[:, -2:].set(pad_id)          # exercise the pad mask
    labels = jax.random.randint(kl, (B, S), 0, target_range, dtype=jnp.int32)

    y, (hn, cn) = feed_back_lstm_forward(params, input_ids, labels, pad_id, target_range,
                                         matmul_dtype=jnp.float32)
    jax.block_until_ready((y, hn, cn))
    y_r, (hn_r, cn_r) = reference_forward(params, input_ids, labels, pad_id, target_range)
    np.testing.assert_allclose(np.asarray(y), np.asarray(y_r), rtol=1e-4, atol=1e-5)
    np.testing.assert_allclose(np.asarray(hn), np.asarray(hn_r), rtol=1e-4, atol=1e-5)
    np.testing.assert_allclose(np.asarray(cn), np.asarray(cn_r), rtol=1e-4, atol=1e-5)
    assert y.shape == (B, S) and hn.shape == (1, B, lstm_dim) and cn.shape == (1, B, lstm_dim)

    # --- Test 2: longer sequence, 2 chunks (t_chunk=128) — cross-chunk state carry
    #             + masked final partial chunk, f32 path ---
    B2, S2 = 2, 200
    input_ids2 = jax.random.randint(ki2, (B2, S2), 0, vocab_size, dtype=jnp.int32)
    input_ids2 = input_ids2.at[:, -3:].set(pad_id)
    labels2 = jax.random.randint(kl2, (B2, S2), 0, target_range, dtype=jnp.int32)

    y2, (hn2, cn2) = feed_back_lstm_forward(params, input_ids2, labels2, pad_id, target_range,
                                            t_chunk=128, matmul_dtype=jnp.float32)
    jax.block_until_ready((y2, hn2, cn2))
    y2_r, (hn2_r, cn2_r) = reference_forward(params, input_ids2, labels2, pad_id, target_range)
    np.testing.assert_allclose(np.asarray(y2), np.asarray(y2_r), rtol=1e-4, atol=1e-4)
    np.testing.assert_allclose(np.asarray(hn2), np.asarray(hn2_r), rtol=1e-4, atol=1e-4)
    np.testing.assert_allclose(np.asarray(cn2), np.asarray(cn2_r), rtol=1e-4, atol=1e-4)

    # --- Test 3: default path (bf16 matmuls / gx / h_hist, f32 state & accumulation) ---
    y3, (hn3, cn3) = feed_back_lstm_forward(params, input_ids2, labels2, pad_id, target_range)
    jax.block_until_ready((y3, hn3, cn3))
    np.testing.assert_allclose(np.asarray(y3), np.asarray(y2_r), rtol=5e-2, atol=5e-2)
    np.testing.assert_allclose(np.asarray(hn3), np.asarray(hn2_r), rtol=5e-2, atol=5e-2)

    # --- Test 4: explicit 2-way batch split (v7x-style, one block per TensorCore) ---
    B4, S4 = 16, 8
    input_ids4 = jax.random.randint(ki3, (B4, S4), 0, vocab_size, dtype=jnp.int32)
    input_ids4 = input_ids4.at[:, -1:].set(pad_id)
    labels4 = jax.random.randint(kl3, (B4, S4), 0, target_range, dtype=jnp.int32)
    y4, (hn4, cn4) = feed_back_lstm_forward(params, input_ids4, labels4, pad_id, target_range,
                                            matmul_dtype=jnp.float32, num_batch_blocks=2)
    jax.block_until_ready((y4, hn4, cn4))
    y4_r, (hn4_r, cn4_r) = reference_forward(params, input_ids4, labels4, pad_id, target_range)
    np.testing.assert_allclose(np.asarray(y4), np.asarray(y4_r), rtol=1e-4, atol=1e-5)
    np.testing.assert_allclose(np.asarray(hn4), np.asarray(hn4_r), rtol=1e-4, atol=1e-5)
    np.testing.assert_allclose(np.asarray(cn4), np.asarray(cn4_r), rtol=1e-4, atol=1e-5)

    print("KERNEL_OK")
</pallas_src>

<mosaic_0001>
module attributes {stable_mosaic.version = 11 : i64} {
  func.func @lstm_chunk_kernel(%arg0: i32, %arg1: i32, %arg2: memref<8x8x128xf32, #tpu.memory_space<vmem>>, %arg3: memref<32x128xf32, #tpu.memory_space<vmem>>, %arg4: memref<32x32xf32, #tpu.memory_space<vmem>>, %arg5: memref<1x32xf32, #tpu.memory_space<vmem>>, %arg6: memref<1x32xf32, #tpu.memory_space<vmem>>, %arg7: memref<1x1xf32, #tpu.memory_space<vmem>>, %arg8: memref<8x8xf32, #tpu.memory_space<vmem>>, %arg9: memref<8x32xf32, #tpu.memory_space<vmem>>, %arg10: memref<8x32xf32, #tpu.memory_space<vmem>>, %arg11: memref<8x32xf32, #tpu.memory_space<vmem>>, %arg12: memref<8x32xf32, #tpu.memory_space<vmem>>, %arg13: memref<8x8x32xf32, #tpu.memory_space<vmem>>) attributes {dimension_semantics = [#tpu.dimension_semantics<parallel>, #tpu.dimension_semantics<arbitrary>], iteration_bounds = array<i64: 1, 1>, scalar_prefetch = 0 : i64, scratch_operands = 3 : i64, tpu.core_type = #tpu.core_type<tc>, window_params = [{transform_indices = @transform_0, window_bounds = array<i64: 8, 8, 128>}, {pipeline_mode = #tpu.pipeline_mode<synchronous>, transform_indices = @transform_1, window_bounds = array<i64: 32, 128>}, {pipeline_mode = #tpu.pipeline_mode<synchronous>, transform_indices = @transform_2, window_bounds = array<i64: 32, 32>}, {pipeline_mode = #tpu.pipeline_mode<synchronous>, transform_indices = @transform_3, window_bounds = array<i64: 1, 32>}, {pipeline_mode = #tpu.pipeline_mode<synchronous>, transform_indices = @transform_4, window_bounds = array<i64: 1, 32>}, {pipeline_mode = #tpu.pipeline_mode<synchronous>, transform_indices = @transform_5, window_bounds = array<i64: 1, 1>}, {transform_indices = @transform_6, window_bounds = array<i64: 8, 8>}, {transform_indices = @transform_7, window_bounds = array<i64: 8, 32>}, {transform_indices = @transform_8, window_bounds = array<i64: 8, 32>}]} {
    %c0_i32 = arith.constant 0 : i32
    %0 = arith.cmpi eq, %arg1, %c0_i32 : i32
    %1 = arith.extui %0 : i1 to i32
    %c0_i32_0 = arith.constant 0 : i32
    %2 = arith.cmpi ne, %1, %c0_i32_0 : i32
    scf.if %2 {
      %cst_75 = arith.constant 0.000000e+00 : f32
      %222 = vector.broadcast %cst_75 : f32 to vector<8x32xf32>
      %c0_76 = arith.constant 0 : index
      %c0_77 = arith.constant 0 : index
      %223 = vector.load %arg11[%c0_76, %c0_77] : memref<8x32xf32, #tpu.memory_space<vmem>>, vector<8x32xf32>
      tpu.vector_store %arg11[%c0_76, %c0_77], %222 {strides = array<i32>} : memref<8x32xf32, #tpu.memory_space<vmem>>, vector<8x32xf32>,
      %cst_78 = arith.constant 0.000000e+00 : f32
      %224 = vector.broadcast %cst_78 : f32 to vector<8x32xf32>
      %c0_79 = arith.constant 0 : index
      %c0_80 = arith.constant 0 : index
      %225 = vector.load %arg12[%c0_79, %c0_80] : memref<8x32xf32, #tpu.memory_space<vmem>>, vector<8x32xf32>
      tpu.vector_store %arg12[%c0_79, %c0_80], %224 {strides = array<i32>} : memref<8x32xf32, #tpu.memory_space<vmem>>, vector<8x32xf32>,
    } else {
    }
    %c0 = arith.constant 0 : index
    %c0_1 = arith.constant 0 : index
    %3 = vector.load %arg3[%c0, %c0_1] : memref<32x128xf32, #tpu.memory_space<vmem>>, vector<32x128xf32>
    %c0_2 = arith.constant 0 : index
    %c0_3 = arith.constant 0 : index
    %4 = vector.load %arg11[%c0_2, %c0_3] : memref<8x32xf32, #tpu.memory_space<vmem>>, vector<8x32xf32>
    %c0_4 = arith.constant 0 : index
    %c0_5 = arith.constant 0 : index
    %5 = vector.load %arg12[%c0_4, %c0_5] : memref<8x32xf32, #tpu.memory_space<vmem>>, vector<8x32xf32>
    %c0_i32_6 = arith.constant 0 : i32
    %6 = arith.index_cast %c0_i32_6 : i32 to index
    %c0_7 = arith.constant 0 : index
    %c0_8 = arith.constant 0 : index
    %7 = vector.load %arg2[%6, %c0_7, %c0_8] : memref<8x8x128xf32, #tpu.memory_space<vmem>>, vector<1x8x128xf32>
    %8 = vector.shape_cast %7 : vector<1x8x128xf32> to vector<8x128xf32>
    %cst = arith.constant dense<0.000000e+00> : vector<8x128xf32>
    %9 = tpu.matmul %4, %3, %cst {dimension_numbers = #tpu.dot_dimension_numbers<[1], [0], [0], [1], [0, 0, 1, 1], [], []>} : vector<8x32xf32>, vector<32x128xf32>, vector<8x128xf32> -> vector<8x128xf32>
    %10 = arith.addf %8, %9 : vector<8x128xf32>
    %11 = arith.negf %10 : vector<8x128xf32>
    %12 = math.exp %11 : vector<8x128xf32>
    %cst_9 = arith.constant 1.000000e+00 : f32
    %13 = vector.broadcast %cst_9 : f32 to vector<8x128xf32>
    %14 = arith.addf %13, %12 : vector<8x128xf32>
    %15 = arith.divf %13, %14 : vector<8x128xf32>
    %16 = vector.extract_strided_slice %15 {offsets = [0, 0], sizes = [8, 32], strides = [1, 1]} : vector<8x128xf32> to vector<8x32xf32>
    %17 = vector.extract_strided_slice %15 {offsets = [0, 32], sizes = [8, 32], strides = [1, 1]} : vector<8x128xf32> to vector<8x32xf32>
    %18 = vector.extract_strided_slice %15 {offsets = [0, 96], sizes = [8, 32], strides = [1, 1]} : vector<8x128xf32> to vector<8x32xf32>
    %19 = vector.extract_strided_slice %10 {offsets = [0, 64], sizes = [8, 32], strides = [1, 1]} : vector<8x128xf32> to vector<8x32xf32>
    %20 = math.tanh %19 : vector<8x32xf32>
    %21 = arith.mulf %17, %5 : vector<8x32xf32>
    %22 = arith.mulf %16, %20 : vector<8x32xf32>
    %23 = arith.addf %21, %22 : vector<8x32xf32>
    %24 = math.tanh %23 : vector<8x32xf32>
    %25 = arith.mulf %18, %24 : vector<8x32xf32>
    %26 = arith.index_cast %c0_i32_6 : i32 to index
    %c0_10 = arith.constant 0 : index
    %c0_11 = arith.constant 0 : index
    %27 = vector.load %arg13[%26, %c0_10, %c0_11] : memref<8x8x32xf32, #tpu.memory_space<vmem>>, vector<1x8x32xf32>
    %28 = vector.shape_cast %27 : vector<1x8x32xf32> to vector<8x32xf32>
    %29 = vector.shape_cast %25 : vector<8x32xf32> to vector<1x8x32xf32>
    tpu.vector_store %arg13[%26, %c0_10, %c0_11], %29 {strides = array<i32>} : memref<8x8x32xf32, #tpu.memory_space<vmem>>, vector<1x8x32xf32>,
    %c1_i32 = arith.constant 1 : i32
    %30 = arith.index_cast %c1_i32 : i32 to index
    %c0_12 = arith.constant 0 : index
    %c0_13 = arith.constant 0 : index
    %31 = vector.load %arg2[%30, %c0_12, %c0_13] : memref<8x8x128xf32, #tpu.memory_space<vmem>>, vector<1x8x128xf32>
    %32 = vector.shape_cast %31 : vector<1x8x128xf32> to vector<8x128xf32>
    %cst_14 = arith.constant dense<0.000000e+00> : vector<8x128xf32>
    %33 = tpu.matmul %25, %3, %cst_14 {dimension_numbers = #tpu.dot_dimension_numbers<[1], [0], [0], [1], [0, 0, 1, 1], [], []>} : vector<8x32xf32>, vector<32x128xf32>, vector<8x128xf32> -> vector<8x128xf32>
    %34 = arith.addf %32, %33 : vector<8x128xf32>
    %35 = arith.negf %34 : vector<8x128xf32>
    %36 = math.exp %35 : vector<8x128xf32>
    %cst_15 = arith.constant 1.000000e+00 : f32
    %37 = vector.broadcast %cst_15 : f32 to vector<8x128xf32>
    %38 = arith.addf %37, %36 : vector<8x128xf32>
    %39 = arith.divf %37, %38 : vector<8x128xf32>
    %40 = vector.extract_strided_slice %39 {offsets = [0, 0], sizes = [8, 32], strides = [1, 1]} : vector<8x128xf32> to vector<8x32xf32>
    %41 = vector.extract_strided_slice %39 {offsets = [0, 32], sizes = [8, 32], strides = [1, 1]} : vector<8x128xf32> to vector<8x32xf32>
    %42 = vector.extract_strided_slice %39 {offsets = [0, 96], sizes = [8, 32], strides = [1, 1]} : vector<8x128xf32> to vector<8x32xf32>
    %43 = vector.extract_strided_slice %34 {offsets = [0, 64], sizes = [8, 32], strides = [1, 1]} : vector<8x128xf32> to vector<8x32xf32>
    %44 = math.tanh %43 : vector<8x32xf32>
    %45 = arith.mulf %41, %23 : vector<8x32xf32>
    %46 = arith.mulf %40, %44 : vector<8x32xf32>
    %47 = arith.addf %45, %46 : vector<8x32xf32>
    %48 = math.tanh %47 : vector<8x32xf32>
    %49 = arith.mulf %42, %48 : vector<8x32xf32>
    %50 = arith.index_cast %c1_i32 : i32 to index
    %c0_16 = arith.constant 0 : index
    %c0_17 = arith.constant 0 : index
    %51 = vector.load %arg13[%50, %c0_16, %c0_17] : memref<8x8x32xf32, #tpu.memory_space<vmem>>, vector<1x8x32xf32>
    %52 = vector.shape_cast %51 : vector<1x8x32xf32> to vector<8x32xf32>
    %53 = vector.shape_cast %49 : vector<8x32xf32> to vector<1x8x32xf32>
    tpu.vector_store %arg13[%50, %c0_16, %c0_17], %53 {strides = array<i32>} : memref<8x8x32xf32, #tpu.memory_space<vmem>>, vector<1x8x32xf32>,
    %c2_i32 = arith.constant 2 : i32
    %54 = arith.index_cast %c2_i32 : i32 to index
    %c0_18 = arith.constant 0 : index
    %c0_19 = arith.constant 0 : index
    %55 = vector.load %arg2[%54, %c0_18, %c0_19] : memref<8x8x128xf32, #tpu.memory_space<vmem>>, vector<1x8x128xf32>
    %56 = vector.shape_cast %55 : vector<1x8x128xf32> to vector<8x128xf32>
    %cst_20 = arith.constant dense<0.000000e+00> : vector<8x128xf32>
    %57 = tpu.matmul %49, %3, %cst_20 {dimension_numbers = #tpu.dot_dimension_numbers<[1], [0], [0], [1], [0, 0, 1, 1], [], []>} : vector<8x32xf32>, vector<32x128xf32>, vector<8x128xf32> -> vector<8x128xf32>
    %58 = arith.addf %56, %57 : vector<8x128xf32>
    %59 = arith.negf %58 : vector<8x128xf32>
    %60 = math.exp %59 : vector<8x128xf32>
    %cst_21 = arith.constant 1.000000e+00 : f32
    %61 = vector.broadcast %cst_21 : f32 to vector<8x128xf32>
    %62 = arith.addf %61, %60 : vector<8x128xf32>
    %63 = arith.divf %61, %62 : vector<8x128xf32>
    %64 = vector.extract_strided_slice %63 {offsets = [0, 0], sizes = [8, 32], strides = [1, 1]} : vector<8x128xf32> to vector<8x32xf32>
    %65 = vector.extract_strided_slice %63 {offsets = [0, 32], sizes = [8, 32], strides = [1, 1]} : vector<8x128xf32> to vector<8x32xf32>
    %66 = vector.extract_strided_slice %63 {offsets = [0, 96], sizes = [8, 32], strides = [1, 1]} : vector<8x128xf32> to vector<8x32xf32>
    %67 = vector.extract_strided_slice %58 {offsets = [0, 64], sizes = [8, 32], strides = [1, 1]} : vector<8x128xf32> to vector<8x32xf32>
    %68 = math.tanh %67 : vector<8x32xf32>
    %69 = arith.mulf %65, %47 : vector<8x32xf32>
    %70 = arith.mulf %64, %68 : vector<8x32xf32>
    %71 = arith.addf %69, %70 : vector<8x32xf32>
    %72 = math.tanh %71 : vector<8x32xf32>
    %73 = arith.mulf %66, %72 : vector<8x32xf32>
    %74 = arith.index_cast %c2_i32 : i32 to index
    %c0_22 = arith.constant 0 : index
    %c0_23 = arith.constant 0 : index
    %75 = vector.load %arg13[%74, %c0_22, %c0_23] : memref<8x8x32xf32, #tpu.memory_space<vmem>>, vector<1x8x32xf32>
    %76 = vector.shape_cast %75 : vector<1x8x32xf32> to vector<8x32xf32>
    %77 = vector.shape_cast %73 : vector<8x32xf32> to vector<1x8x32xf32>
    tpu.vector_store %arg13[%74, %c0_22, %c0_23], %77 {strides = array<i32>} : memref<8x8x32xf32, #tpu.memory_space<vmem>>, vector<1x8x32xf32>,
    %c3_i32 = arith.constant 3 : i32
    %78 = arith.index_cast %c3_i32 : i32 to index
    %c0_24 = arith.constant 0 : index
    %c0_25 = arith.constant 0 : index
    %79 = vector.load %arg2[%78, %c0_24, %c0_25] : memref<8x8x128xf32, #tpu.memory_space<vmem>>, vector<1x8x128xf32>
    %80 = vector.shape_cast %79 : vector<1x8x128xf32> to vector<8x128xf32>
    %cst_26 = arith.constant dense<0.000000e+00> : vector<8x128xf32>
    %81 = tpu.matmul %73, %3, %cst_26 {dimension_numbers = #tpu.dot_dimension_numbers<[1], [0], [0], [1], [0, 0, 1, 1], [], []>} : vector<8x32xf32>, vector<32x128xf32>, vector<8x128xf32> -> vector<8x128xf32>
    %82 = arith.addf %80, %81 : vector<8x128xf32>
    %83 = arith.negf %82 : vector<8x128xf32>
    %84 = math.exp %83 : vector<8x128xf32>
    %cst_27 = arith.constant 1.000000e+00 : f32
    %85 = vector.broadcast %cst_27 : f32 to vector<8x128xf32>
    %86 = arith.addf %85, %84 : vector<8x128xf32>
    %87 = arith.divf %85, %86 : vector<8x128xf32>
    %88 = vector.extract_strided_slice %87 {offsets = [0, 0], sizes = [8, 32], strides = [1, 1]} : vector<8x128xf32> to vector<8x32xf32>
    %89 = vector.extract_strided_slice %87 {offsets = [0, 32], sizes = [8, 32], strides = [1, 1]} : vector<8x128xf32> to vector<8x32xf32>
    %90 = vector.extract_strided_slice %87 {offsets = [0, 96], sizes = [8, 32], strides = [1, 1]} : vector<8x128xf32> to vector<8x32xf32>
    %91 = vector.extract_strided_slice %82 {offsets = [0, 64], sizes = [8, 32], strides = [1, 1]} : vector<8x128xf32> to vector<8x32xf32>
    %92 = math.tanh %91 : vector<8x32xf32>
    %93 = arith.mulf %89, %71 : vector<8x32xf32>
    %94 = arith.mulf %88, %92 : vector<8x32xf32>
    %95 = arith.addf %93, %94 : vector<8x32xf32>
    %96 = math.tanh %95 : vector<8x32xf32>
    %97 = arith.mulf %90, %96 : vector<8x32xf32>
    %98 = arith.index_cast %c3_i32 : i32 to index
    %c0_28 = arith.constant 0 : index
    %c0_29 = arith.constant 0 : index
    %99 = vector.load %arg13[%98, %c0_28, %c0_29] : memref<8x8x32xf32, #tpu.memory_space<vmem>>, vector<1x8x32xf32>
    %100 = vector.shape_cast %99 : vector<1x8x32xf32> to vector<8x32xf32>
    %101 = vector.shape_cast %97 : vector<8x32xf32> to vector<1x8x32xf32>
    tpu.vector_store %arg13[%98, %c0_28, %c0_29], %101 {strides = array<i32>} : memref<8x8x32xf32, #tpu.memory_space<vmem>>, vector<1x8x32xf32>,
    %c4_i32 = arith.constant 4 : i32
    %102 = arith.index_cast %c4_i32 : i32 to index
    %c0_30 = arith.constant 0 : index
    %c0_31 = arith.constant 0 : index
    %103 = vector.load %arg2[%102, %c0_30, %c0_31] : memref<8x8x128xf32, #tpu.memory_space<vmem>>, vector<1x8x128xf32>
    %104 = vector.shape_cast %103 : vector<1x8x128xf32> to vector<8x128xf32>
    %cst_32 = arith.constant dense<0.000000e+00> : vector<8x128xf32>
    %105 = tpu.matmul %97, %3, %cst_32 {dimension_numbers = #tpu.dot_dimension_numbers<[1], [0], [0], [1], [0, 0, 1, 1], [], []>} : vector<8x32xf32>, vector<32x128xf32>, vector<8x128xf32> -> vector<8x128xf32>
    %106 = arith.addf %104, %105 : vector<8x128xf32>
    %107 = arith.negf %106 : vector<8x128xf32>
    %108 = math.exp %107 : vector<8x128xf32>
    %cst_33 = arith.constant 1.000000e+00 : f32
    %109 = vector.broadcast %cst_33 : f32 to vector<8x128xf32>
    %110 = arith.addf %109, %108 : vector<8x128xf32>
    %111 = arith.divf %109, %110 : vector<8x128xf32>
    %112 = vector.extract_strided_slice %111 {offsets = [0, 0], sizes = [8, 32], strides = [1, 1]} : vector<8x128xf32> to vector<8x32xf32>
    %113 = vector.extract_strided_slice %111 {offsets = [0, 32], sizes = [8, 32], strides = [1, 1]} : vector<8x128xf32> to vector<8x32xf32>
    %114 = vector.extract_strided_slice %111 {offsets = [0, 96], sizes = [8, 32], strides = [1, 1]} : vector<8x128xf32> to vector<8x32xf32>
    %115 = vector.extract_strided_slice %106 {offsets = [0, 64], sizes = [8, 32], strides = [1, 1]} : vector<8x128xf32> to vector<8x32xf32>
    %116 = math.tanh %115 : vector<8x32xf32>
    %117 = arith.mulf %113, %95 : vector<8x32xf32>
    %118 = arith.mulf %112, %116 : vector<8x32xf32>
    %119 = arith.addf %117, %118 : vector<8x32xf32>
    %120 = math.tanh %119 : vector<8x32xf32>
    %121 = arith.mulf %114, %120 : vector<8x32xf32>
    %122 = arith.index_cast %c4_i32 : i32 to index
    %c0_34 = arith.constant 0 : index
    %c0_35 = arith.constant 0 : index
    %123 = vector.load %arg13[%122, %c0_34, %c0_35] : memref<8x8x32xf32, #tpu.memory_space<vmem>>, vector<1x8x32xf32>
    %124 = vector.shape_cast %123 : vector<1x8x32xf32> to vector<8x32xf32>
    %125 = vector.shape_cast %121 : vector<8x32xf32> to vector<1x8x32xf32>
    tpu.vector_store %arg13[%122, %c0_34, %c0_35], %125 {strides = array<i32>} : memref<8x8x32xf32, #tpu.memory_space<vmem>>, vector<1x8x32xf32>,
    %c5_i32 = arith.constant 5 : i32
    %126 = arith.index_cast %c5_i32 : i32 to index
    %c0_36 = arith.constant 0 : index
    %c0_37 = arith.constant 0 : index
    %127 = vector.load %arg2[%126, %c0_36, %c0_37] : memref<8x8x128xf32, #tpu.memory_space<vmem>>, vector<1x8x128xf32>
    %128 = vector.shape_cast %127 : vector<1x8x128xf32> to vector<8x128xf32>
    %cst_38 = arith.constant dense<0.000000e+00> : vector<8x128xf32>
    %129 = tpu.matmul %121, %3, %cst_38 {dimension_numbers = #tpu.dot_dimension_numbers<[1], [0], [0], [1], [0, 0, 1, 1], [], []>} : vector<8x32xf32>, vector<32x128xf32>, vector<8x128xf32> -> vector<8x128xf32>
    %130 = arith.addf %128, %129 : vector<8x128xf32>
    %131 = arith.negf %130 : vector<8x128xf32>
    %132 = math.exp %131 : vector<8x128xf32>
    %cst_39 = arith.constant 1.000000e+00 : f32
    %133 = vector.broadcast %cst_39 : f32 to vector<8x128xf32>
    %134 = arith.addf %133, %132 : vector<8x128xf32>
    %135 = arith.divf %133, %134 : vector<8x128xf32>
    %136 = vector.extract_strided_slice %135 {offsets = [0, 0], sizes = [8, 32], strides = [1, 1]} : vector<8x128xf32> to vector<8x32xf32>
    %137 = vector.extract_strided_slice %135 {offsets = [0, 32], sizes = [8, 32], strides = [1, 1]} : vector<8x128xf32> to vector<8x32xf32>
    %138 = vector.extract_strided_slice %135 {offsets = [0, 96], sizes = [8, 32], strides = [1, 1]} : vector<8x128xf32> to vector<8x32xf32>
    %139 = vector.extract_strided_slice %130 {offsets = [0, 64], sizes = [8, 32], strides = [1, 1]} : vector<8x128xf32> to vector<8x32xf32>
    %140 = math.tanh %139 : vector<8x32xf32>
    %141 = arith.mulf %137, %119 : vector<8x32xf32>
    %142 = arith.mulf %136, %140 : vector<8x32xf32>
    %143 = arith.addf %141, %142 : vector<8x32xf32>
    %144 = math.tanh %143 : vector<8x32xf32>
    %145 = arith.mulf %138, %144 : vector<8x32xf32>
    %146 = arith.index_cast %c5_i32 : i32 to index
    %c0_40 = arith.constant 0 : index
    %c0_41 = arith.constant 0 : index
    %147 = vector.load %arg13[%146, %c0_40, %c0_41] : memref<8x8x32xf32, #tpu.memory_space<vmem>>, vector<1x8x32xf32>
    %148 = vector.shape_cast %147 : vector<1x8x32xf32> to vector<8x32xf32>
    %149 = vector.shape_cast %145 : vector<8x32xf32> to vector<1x8x32xf32>
    tpu.vector_store %arg13[%146, %c0_40, %c0_41], %149 {strides = array<i32>} : memref<8x8x32xf32, #tpu.memory_space<vmem>>, vector<1x8x32xf32>,
    %c6_i32 = arith.constant 6 : i32
    %150 = arith.index_cast %c6_i32 : i32 to index
    %c0_42 = arith.constant 0 : index
    %c0_43 = arith.constant 0 : index
    %151 = vector.load %arg2[%150, %c0_42, %c0_43] : memref<8x8x128xf32, #tpu.memory_space<vmem>>, vector<1x8x128xf32>
    %152 = vector.shape_cast %151 : vector<1x8x128xf32> to vector<8x128xf32>
    %cst_44 = arith.constant dense<0.000000e+00> : vector<8x128xf32>
    %153 = tpu.matmul %145, %3, %cst_44 {dimension_numbers = #tpu.dot_dimension_numbers<[1], [0], [0], [1], [0, 0, 1, 1], [], []>} : vector<8x32xf32>, vector<32x128xf32>, vector<8x128xf32> -> vector<8x128xf32>
    %154 = arith.addf %152, %153 : vector<8x128xf32>
    %155 = arith.negf %154 : vector<8x128xf32>
    %156 = math.exp %155 : vector<8x128xf32>
    %cst_45 = arith.constant 1.000000e+00 : f32
    %157 = vector.broadcast %cst_45 : f32 to vector<8x128xf32>
    %158 = arith.addf %157, %156 : vector<8x128xf32>
    %159 = arith.divf %157, %158 : vector<8x128xf32>
    %160 = vector.extract_strided_slice %159 {offsets = [0, 0], sizes = [8, 32], strides = [1, 1]} : vector<8x128xf32> to vector<8x32xf32>
    %161 = vector.extract_strided_slice %159 {offsets = [0, 32], sizes = [8, 32], strides = [1, 1]} : vector<8x128xf32> to vector<8x32xf32>
    %162 = vector.extract_strided_slice %159 {offsets = [0, 96], sizes = [8, 32], strides = [1, 1]} : vector<8x128xf32> to vector<8x32xf32>
    %163 = vector.extract_strided_slice %154 {offsets = [0, 64], sizes = [8, 32], strides = [1, 1]} : vector<8x128xf32> to vector<8x32xf32>
    %164 = math.tanh %163 : vector<8x32xf32>
    %165 = arith.mulf %161, %143 : vector<8x32xf32>
    %166 = arith.mulf %160, %164 : vector<8x32xf32>
    %167 = arith.addf %165, %166 : vector<8x32xf32>
    %168 = math.tanh %167 : vector<8x32xf32>
    %169 = arith.mulf %162, %168 : vector<8x32xf32>
    %170 = arith.index_cast %c6_i32 : i32 to index
    %c0_46 = arith.constant 0 : index
    %c0_47 = arith.constant 0 : index
    %171 = vector.load %arg13[%170, %c0_46, %c0_47] : memref<8x8x32xf32, #tpu.memory_space<vmem>>, vector<1x8x32xf32>
    %172 = vector.shape_cast %171 : vector<1x8x32xf32> to vector<8x32xf32>
    %173 = vector.shape_cast %169 : vector<8x32xf32> to vector<1x8x32xf32>
    tpu.vector_store %arg13[%170, %c0_46, %c0_47], %173 {strides = array<i32>} : memref<8x8x32xf32, #tpu.memory_space<vmem>>, vector<1x8x32xf32>,
    %c7_i32 = arith.constant 7 : i32
    %174 = arith.index_cast %c7_i32 : i32 to index
    %c0_48 = arith.constant 0 : index
    %c0_49 = arith.constant 0 : index
    %175 = vector.load %arg2[%174, %c0_48, %c0_49] : memref<8x8x128xf32, #tpu.memory_space<vmem>>, vector<1x8x128xf32>
    %176 = vector.shape_cast %175 : vector<1x8x128xf32> to vector<8x128xf32>
    %cst_50 = arith.constant dense<0.000000e+00> : vector<8x128xf32>
    %177 = tpu.matmul %169, %3, %cst_50 {dimension_numbers = #tpu.dot_dimension_numbers<[1], [0], [0], [1], [0, 0, 1, 1], [], []>} : vector<8x32xf32>, vector<32x128xf32>, vector<8x128xf32> -> vector<8x128xf32>
    %178 = arith.addf %176, %177 : vector<8x128xf32>
    %179 = arith.negf %178 : vector<8x128xf32>
    %180 = math.exp %179 : vector<8x128xf32>
    %cst_51 = arith.constant 1.000000e+00 : f32
    %181 = vector.broadcast %cst_51 : f32 to vector<8x128xf32>
    %182 = arith.addf %181, %180 : vector<8x128xf32>
    %183 = arith.divf %181, %182 : vector<8x128xf32>
    %184 = vector.extract_strided_slice %183 {offsets = [0, 0], sizes = [8, 32], strides = [1, 1]} : vector<8x128xf32> to vector<8x32xf32>
    %185 = vector.extract_strided_slice %183 {offsets = [0, 32], sizes = [8, 32], strides = [1, 1]} : vector<8x128xf32> to vector<8x32xf32>
    %186 = vector.extract_strided_slice %183 {offsets = [0, 96], sizes = [8, 32], strides = [1, 1]} : vector<8x128xf32> to vector<8x32xf32>
    %187 = vector.extract_strided_slice %178 {offsets = [0, 64], sizes = [8, 32], strides = [1, 1]} : vector<8x128xf32> to vector<8x32xf32>
    %188 = math.tanh %187 : vector<8x32xf32>
    %189 = arith.mulf %185, %167 : vector<8x32xf32>
    %190 = arith.mulf %184, %188 : vector<8x32xf32>
    %191 = arith.addf %189, %190 : vector<8x32xf32>
    %192 = math.tanh %191 : vector<8x32xf32>
    %193 = arith.mulf %186, %192 : vector<8x32xf32>
    %194 = arith.index_cast %c7_i32 : i32 to index
    %c0_52 = arith.constant 0 : index
    %c0_53 = arith.constant 0 : index
    %195 = vector.load %arg13[%194, %c0_52, %c0_53] : memref<8x8x32xf32, #tpu.memory_space<vmem>>, vector<1x8x32xf32>
    %196 = vector.shape_cast %195 : vector<1x8x32xf32> to vector<8x32xf32>
    %197 = vector.shape_cast %193 : vector<8x32xf32> to vector<1x8x32xf32>
    tpu.vector_store %arg13[%194, %c0_52, %c0_53], %197 {strides = array<i32>} : memref<8x8x32xf32, #tpu.memory_space<vmem>>, vector<1x8x32xf32>,
    %c8_i32 = arith.constant 8 : i32
    %c0_54 = arith.constant 0 : index
    %c0_55 = arith.constant 0 : index
    %198 = vector.load %arg11[%c0_54, %c0_55] : memref<8x32xf32, #tpu.memory_space<vmem>>, vector<8x32xf32>
    tpu.vector_store %arg11[%c0_54, %c0_55], %193 {strides = array<i32>} : memref<8x32xf32, #tpu.memory_space<vmem>>, vector<8x32xf32>,
    %c0_56 = arith.constant 0 : index
    %c0_57 = arith.constant 0 : index
    %199 = vector.load %arg12[%c0_56, %c0_57] : memref<8x32xf32, #tpu.memory_space<vmem>>, vector<8x32xf32>
    tpu.vector_store %arg12[%c0_56, %c0_57], %191 {strides = array<i32>} : memref<8x32xf32, #tpu.memory_space<vmem>>, vector<8x32xf32>,
    %c0_58 = arith.constant 0 : index
    %c0_59 = arith.constant 0 : index
    %c0_60 = arith.constant 0 : index
    %200 = vector.load %arg13[%c0_58, %c0_59, %c0_60] : memref<8x8x32xf32, #tpu.memory_space<vmem>>, vector<8x8x32xf32>
    %201 = vector.shape_cast %200 : vector<8x8x32xf32> to vector<64x32xf32>
    %c0_61 = arith.constant 0 : index
    %c0_62 = arith.constant 0 : index
    %202 = vector.load %arg4[%c0_61, %c0_62] : memref<32x32xf32, #tpu.memory_space<vmem>>, vector<32x32xf32>
    %cst_63 = arith.constant dense<0.000000e+00> : vector<64x32xf32>
    %203 = tpu.matmul %201, %202, %cst_63 {dimension_numbers = #tpu.dot_dimension_numbers<[1], [0], [0], [1], [0, 0, 1, 1], [], []>} : vector<64x32xf32>, vector<32x32xf32>, vector<64x32xf32> -> vector<64x32xf32>
    %c0_64 = arith.constant 0 : index
    %c0_65 = arith.constant 0 : index
    %204 = vector.load %arg5[%c0_64, %c0_65] : memref<1x32xf32, #tpu.memory_space<vmem>>, vector<1x32xf32>
    %205 = vector.broadcast %204 : vector<1x32xf32> to vector<64x32xf32>
    %206 = arith.addf %203, %205 : vector<64x32xf32>
    %207 = math.tanh %206 : vector<64x32xf32>
    %208 = vector.shape_cast %207 : vector<64x32xf32> to vector<8x8x32xf32>
    %c0_66 = arith.constant 0 : index
    %c0_67 = arith.constant 0 : index
    %209 = vector.load %arg6[%c0_66, %c0_67] : memref<1x32xf32, #tpu.memory_space<vmem>>, vector<1x32xf32>
    %210 = vector.shape_cast %209 : vector<1x32xf32> to vector<1x1x32xf32>
    %211 = vector.broadcast %210 : vector<1x1x32xf32> to vector<8x8x32xf32>
    %212 = arith.mulf %208, %211 : vector<8x8x32xf32>
    %cst_68 = arith.constant dense<0.000000e+00> : vector<8x8xf32>
    %213 = vector.multi_reduction <add>, %212, %cst_68 [2] : vector<8x8x32xf32> to vector<8x8xf32>
    %c0_69 = arith.constant 0 : index
    %c0_70 = arith.constant 0 : index
    %214 = vector.load %arg7[%c0_69, %c0_70] : memref<1x1xf32, #tpu.memory_space<vmem>>, vector<1x1xf32>
    %215 = vector.broadcast %214 : vector<1x1xf32> to vector<8x8xf32>
    %216 = arith.addf %213, %215 : vector<8x8xf32>
    %217 = tpu.transpose %216, [1, 0] : vector<8x8xf32> -> vector<8x8xf32>
    %c0_71 = arith.constant 0 : index
    %c0_72 = arith.constant 0 : index
    %218 = vector.load %arg8[%c0_71, %c0_72] : memref<8x8xf32, #tpu.memory_space<vmem>>, vector<8x8xf32>
    tpu.vector_store %arg8[%c0_71, %c0_72], %217 {strides = array<i32>} : memref<8x8xf32, #tpu.memory_space<vmem>>, vector<8x8xf32>,
    %c0_i32_73 = arith.constant 0 : i32
    %219 = arith.cmpi eq, %arg1, %c0_i32_73 : i32
    %220 = arith.extui %219 : i1 to i32
    %c0_i32_74 = arith.constant 0 : i32
    %221 = arith.cmpi ne, %220, %c0_i32_74 : i32
    scf.if %221 {
      %c0_75 = arith.constant 0 : index
      %c0_76 = arith.constant 0 : index
      %222 = vector.load %arg11[%c0_75, %c0_76] : memref<8x32xf32, #tpu.memory_space<vmem>>, vector<8x32xf32>
      %c0_77 = arith.constant 0 : index
      %c0_78 = arith.constant 0 : index
      %223 = vector.load %arg9[%c0_77, %c0_78] : memref<8x32xf32, #tpu.memory_space<vmem>>, vector<8x32xf32>
      tpu.vector_store %arg9[%c0_77, %c0_78], %222 {strides = array<i32>} : memref<8x32xf32, #tpu.memory_space<vmem>>, vector<8x32xf32>,
      %c0_79 = arith.constant 0 : index
      %c0_80 = arith.constant 0 : index
      %224 = vector.load %arg12[%c0_79, %c0_80] : memref<8x32xf32, #tpu.memory_space<vmem>>, vector<8x32xf32>
      %c0_81 = arith.constant 0 : index
      %c0_82 = arith.constant 0 : index
      %225 = vector.load %arg10[%c0_81, %c0_82] : memref<8x32xf32, #tpu.memory_space<vmem>>, vector<8x32xf32>
      tpu.vector_store %arg10[%c0_81, %c0_82], %224 {strides = array<i32>} : memref<8x32xf32, #tpu.memory_space<vmem>>, vector<8x32xf32>,
    } else {
    }
    return
  }
  func.func @transform_0(%arg0: i32, %arg1: i32) -> (i32, i32, i32) {
    %c0_i32 = arith.constant 0 : i32
    %c0_i32_0 = arith.constant 0 : i32
    return %arg1, %arg0, %c0_i32 : i32, i32, i32
  }
  func.func @transform_1(%arg0: i32, %arg1: i32) -> (i32, i32) {
    %c0_i32 = arith.constant 0 : i32
    %c0_i32_0 = arith.constant 0 : i32
    %c0_i32_1 = arith.constant 0 : i32
    return %c0_i32, %c0_i32_0 : i32, i32
  }
  func.func @transform_2(%arg0: i32, %arg1: i32) -> (i32, i32) {
    %c0_i32 = arith.constant 0 : i32
    %c0_i32_0 = arith.constant 0 : i32
    %c0_i32_1 = arith.constant 0 : i32
    return %c0_i32, %c0_i32_0 : i32, i32
  }
  func.func @transform_3(%arg0: i32, %arg1: i32) -> (i32, i32) {
    %c0_i32 = arith.constant 0 : i32
    %c0_i32_0 = arith.constant 0 : i32
    %c0_i32_1 = arith.constant 0 : i32
    return %c0_i32, %c0_i32_0 : i32, i32
  }
  func.func @transform_4(%arg0: i32, %arg1: i32) -> (i32, i32) {
    %c0_i32 = arith.constant 0 : i32
    %c0_i32_0 = arith.constant 0 : i32
    %c0_i32_1 = arith.constant 0 : i32
    return %c0_i32, %c0_i32_0 : i32, i32
  }
  func.func @transform_5(%arg0: i32, %arg1: i32) -> (i32, i32) {
    %c0_i32 = arith.constant 0 : i32
    %c0_i32_0 = arith.constant 0 : i32
    %c0_i32_1 = arith.constant 0 : i32
    return %c0_i32, %c0_i32_0 : i32, i32
  }
  func.func @transform_6(%arg0: i32, %arg1: i32) -> (i32, i32) {
    %c0_i32 = arith.constant 0 : i32
    return %arg0, %arg1 : i32, i32
  }
  func.func @transform_7(%arg0: i32, %arg1: i32) -> (i32, i32) {
    %c0_i32 = arith.constant 0 : i32
    %c0_i32_0 = arith.constant 0 : i32
    return %arg0, %c0_i32 : i32, i32
  }
  func.func @transform_8(%arg0: i32, %arg1: i32) -> (i32, i32) {
    %c0_i32 = arith.constant 0 : i32
    %c0_i32_0 = arith.constant 0 : i32
    return %arg0, %c0_i32 : i32, i32
  }
}

</mosaic_0001>

<bundles_post_ra>
// kernel: tpu_custom_call.1
= control target key start
LH: loop header
LB: loop body
LE: loop exit
PB: predicated region body
PF: predicated region fallthrough
CT: control target
= control target key end

     0   :  { %s1373_s0 = inlined_call_operand.hbm [shape: f32[8,8,128], index: 0, kind: input, shape index: {}]   ;;  %s1374_s1 = inlined_call_operand.hbm [shape: f32[32,128], index: 1, kind: input, shape index: {}]   ;;  %s1375_s2 = inlined_call_operand.hbm [shape: f32[32,32], index: 2, kind: input, shape index: {}]   ;;  %s1376_s3 = inlined_call_operand.vmem [shape: f32[1,32], index: 3, kind: input, shape index: {}]   ;;  %s1377_s4 = inlined_call_operand.vmem [shape: f32[1,32], index: 4, kind: input, shape index: {}]   ;;  %s1378_s5 = inlined_call_operand.<no memory space> [shape: f32[1,1], index: 5, kind: input, shape index: {}]   ;;  %s1379_s6 = inlined_call_operand.hbm [shape: f32[8,8], index: 6, kind: output, shape index: {0}]   ;;  %s1380_s7 = inlined_call_operand.hbm [shape: f32[8,32], index: 7, kind: output, shape index: {1}]   ;;  %s1381_s8 = inlined_call_operand.hbm [shape: f32[8,32], index: 8, kind: output, shape index: {2}]  }
   0x1   :  { %v14_v0 = vstv %s1378_s5 }
   0x2   :  { %15 = vst [vmem:[#allocation5] sm:$0x1] %v14_v0 }
   0x3   :  { %16 = vsyncpa [#allocation7], 0 }
   0x4   :  { %17 = vsyncpa [#allocation10], 0 }
   0x5   :  { %18 = vsyncpa [#allocation8], 0 }
   0x6   :  { %19 = vsyncpa [#allocation14], 0  ;;  %s37_s9 = sshll.u32 %s1374_s1, 4  ;;  %s1193_s10 = smov [#allocation9]   ;;  %s38_s9 = int_to_ptr.hbm [resolvable:$true] %s37_s9 }
   0x7   :  { %s39_s11 = sshll.u32 %s1193_s10, 4  ;;  %s24_s14 = sshll.u32 %s1373_s0, 4  ;;  %s40_s11 = int_to_ptr.vmem [resolvable:$true] %s39_s11  ;;  %s25_s14 = int_to_ptr.hbm [resolvable:$true] %s24_s14 }
   0x8   :  { %s1194_s15 = smov 128   ;;  %s1195_s16 = smov 8  }
   0x9   :  { %45 = dma.hbm_to_vmem [thread:$0]  %s38_s9, 512, %s40_s11, [#allocation10], %s1194_s15, %s1194_s15, %s1195_s16  }
   0xa   :  { %s1196_s5 = smov [#allocation6]   ;;  %s50_s20 = sshll.u32 %s1375_s2, 4  ;;  %s51_s20 = int_to_ptr.hbm [resolvable:$true] %s50_s20 }
   0xb   :  { %s26_s17 = sshll.u32 %s1196_s5, 4  ;;  %s1197_s1 = smov [#allocation11]   ;;  %s27_s17 = int_to_ptr.vmem [resolvable:$true] %s26_s17 }
   0xc   :  { %32 = dma.hbm_to_vmem [thread:$0]  %s25_s14, 1024, %s27_s17, [#allocation7], %s1194_s15, %s1194_s15, %s1195_s16  }
   0xd   :  { %s52_s21 = sshll.u32 %s1197_s1, 4  ;;  %s53_s21 = int_to_ptr.vmem [resolvable:$true] %s52_s21 }
   0xe   :  { %58 = dma.hbm_to_vmem [thread:$0]  %s51_s20, 512, %s53_s21, [#allocation10], %s1194_s15, %s1194_s15, %s1195_s16  }
   0xf   :  { %1185 = dma.done.wait [#allocation7], 1024  }
  0x10   :  { %1186 = vsyncadd [#allocation7], 4294966272 }
  0x11   :  { %1187 = dma.done.wait [#allocation10], 1024  }
  0x12   :  { %1188 = vsyncadd [#allocation10], 4294966272  ;;  %vm81_vm0 = vcmask 261120   ;;  %v1198_v1 = vmov 0.0   ;;  %v87_v2 = vld [vmem:[#allocation9 + $0x18] sm:$0xff]  ;;  %v86_v3 = vld [vmem:[#allocation9 + $0x10] sm:$0xff] }
  0x13   :  { %82 = vst.msk [vmem:[#allocation2] sm:$0xff] %vm81_vm0, %v1198_v1  ;;  %107 = vmatpush.msra.mxu0 %v87_v2  ;;  %v85_v4 = vld [vmem:[#allocation9 + $0x8] sm:$0xff]  ;;  %178 = vmatpush.msra.mxu1 %v87_v2  ;;  %v84_v5 = vld [vmem:[#allocation9] sm:$0xff]  ;;  %s1199_s0 = smov 64   ;;  %s1200_s2 = smov 32   ;;  %v231_v61 = vld [vmem:[#allocation6 + $0x10] sm:$0xff] }
  0x14   :  { %83 = vst.msk [vmem:[#allocation3] sm:$0xff] %vm81_vm0, %v1198_v1  ;;  %246 = vmatpush.msra.mxu2 %v87_v2  ;;  %314 = vmatpush.msra.mxu3 %v87_v2  ;;  %v90_v7 = vld [vmem:[#allocation6] sm:$0xff]  ;;  %v163_v35 = vld [vmem:[#allocation6 + $0x8] sm:$0xff]  ;;  %s876_s29 = sshll.u32 %s1380_s7, 4  ;;  %s1204_s30 = smov [#allocation15]   ;;  %s877_s29 = int_to_ptr.hbm [resolvable:$true] %s876_s29 }
  0x15   :  { %108 = vmatpush.msra.mxu0 %v86_v3  ;;  %179 = vmatpush.msra.mxu1 %v86_v3  ;;  %s885_s9 = sshll.u32 %s1204_s30, 4  ;;  %s887_s12 = sshll.u32 %s1381_s8, 4  ;;  %s886_s9 = int_to_ptr.vmem [resolvable:$true] %s885_s9  ;;  %s888_s12 = int_to_ptr.hbm [resolvable:$true] %s887_s12 }
  0x16   :  { %247 = vmatpush.msra.mxu2 %v86_v3  ;;  %315 = vmatpush.msra.mxu3 %v86_v3  ;;  %s1205_s13 = smov [#allocation12]   ;;  %s865_s5 = sshll.u32 %s1379_s6, 4  ;;  %s866_s5 = int_to_ptr.hbm [resolvable:$true] %s865_s5 }
  0x17   :  { %109 = vmatpush.msra.mxu0 %v85_v4  ;;  %180 = vmatpush.msra.mxu1 %v85_v4  ;;  %s863_s14 = sshll.u32 %s1205_s13, 4  ;;  %s864_s14 = int_to_ptr.vmem [resolvable:$true] %s863_s14 }
  0x18   :  { %248 = vmatpush.msra.mxu2 %v85_v4  ;;  %316 = vmatpush.msra.mxu3 %v85_v4 }
  0x19   :  { %110 = vmatpush.msra.mxu0 %v84_v5  ;;  %181 = vmatpush.msra.mxu1 %v84_v5 }
  0x1a   :  { %v88_v6 = vld [vmem:[#allocation2] sm:$0xff]  ;;  %249 = vmatpush.msra.mxu2 %v84_v5  ;;  %317 = vmatpush.msra.mxu3 %v84_v5 }
  0x1b   :  { %907 = vmatmul.msk.f32.vlgmr.msra.gmra.mxu0 %vm81_vm0, %v88_v6  ;;  %450 = vmatpush.msrb.mxu1 %v87_v2  ;;  %v89_v11 = vld [vmem:[#allocation3] sm:$0xff] }
  0x1c   :  { %382 = vmatpush.msrb.mxu0 %v87_v2  ;;  %518 = vmatpush.msrb.mxu2 %v87_v2 }
  0x1d   :  { %586 = vmatpush.msrb.mxu3 %v87_v2  ;;  %451 = vmatpush.msrb.mxu1 %v86_v3 }
  0x1e   :  { %383 = vmatpush.msrb.mxu0 %v86_v3  ;;  %519 = vmatpush.msrb.mxu2 %v86_v3 }
  0x1f   :  { %587 = vmatpush.msrb.mxu3 %v86_v3  ;;  %452 = vmatpush.msrb.mxu1 %v85_v4 }
  0x20   :  { %384 = vmatpush.msrb.mxu0 %v85_v4  ;;  %520 = vmatpush.msrb.mxu2 %v85_v4 }
  0x21   :  { %588 = vmatpush.msrb.mxu3 %v85_v4  ;;  %453 = vmatpush.msrb.mxu1 %v84_v5 }
  0x22   :  { %385 = vmatpush.msrb.mxu0 %v84_v5  ;;  %521 = vmatpush.msrb.mxu2 %v84_v5 }
  0x23   :  { %589 = vmatpush.msrb.mxu3 %v84_v5 }
  0x98   :  { %v112_v8 = vpop.f32.mrf.mxu0 }
  0x99   :  { %v115_v9 = vadd.f32 %v112_v8, %v90_v7 }
  0x9b   :  { %961 = vtanh.f32 %v115_v9  ;;  %v908_v12 = vmul.f32 -1.442695, %v115_v9 }
  0x9d   :  { %963 = vpow2.f32 %v908_v12 }
  0xa1   :  { %v962_v10 = vpop.eup %961 }
  0xa2   :  { %142 = vrot.lane.b32.xlu0 %v962_v10, %s1199_s0 }
  0xa3   :  { %v964_v13 = vpop.eup %963 }
  0xa4   :  { %v119_v14 = vadd.f32 1.0, %v964_v13 }
  0xa6   :  { %965 = vrcp.f32 %v119_v14  ;;  %v131_v20 = vand.u32 2147483648, %v119_v14  ;;  %vm125_vm2 = vweird.f32 %v119_v14  ;;  %v129_v21 = vand.u32 2147483647, %v119_v14 }
  0xa8   :  { %v132_v23 = vor.u32 1.1754944e-38, %v131_v20  ;;  %vm130_vm4 = vcmp.eq.f32.partialorder %v129_v21, 8.507059e+37 }
  0xaa   :  { %137 = vrot.lane.b32.xlu0 %v89_v11, %s1200_s2 }
  0xac   :  { %v966_v15 = vpop.eup %965 }
  0xad   :  { %v121_v16 = vmul.f32 %v966_v15, %v119_v14  ;;  %vm126_vm1 = vweird.f32 %v966_v15 }
  0xae   :  { %vm127_vm3 = vmor %vm125_vm2, %vm126_vm1 }
  0xaf   :  { %v122_v17 = vsub.f32 1.0, %v121_v16 }
  0xb1   :  { %v123_v18 = vmul.f32 %v966_v15, %v122_v17 }
  0xb3   :  { %v124_v19 = vadd.f32 %v966_v15, %v123_v18 }
  0xb5   :  { %v128_v22 = vsel %vm127_vm3, %v966_v15, %v124_v19 }
  0xb6   :  { %v133_v25 = vsel %vm130_vm4, %v132_v23, %v128_v22  ;;  %v299_v23 = vld [vmem:[#allocation6 + $0x18] sm:$0xff] }
 0x114   :  { %v143_v24 = vpop.permute.xlu0 %142 }
 0x115   :  { %v145_v26 = vmul.f32 %v143_v24, %v133_v25 }
 0x117   :  { %147 = vrot.lane.b32.xlu1 %v145_v26, %s1200_s2 }
 0x11c   :  { %v138_v27 = vpop.permute.xlu0 %137 }
 0x11d   :  { %v140_v28 = vmul.f32 %v138_v27, %v133_v25 }
 0x189   :  { %v148_v29 = vpop.permute.xlu1 %147 }
 0x18a   :  { %v150_v30 = vadd.f32 %v148_v29, %v140_v28 }
 0x18c   :  { %967 = vtanh.f32 %v150_v30 }
 0x192   :  { %v968_v31 = vpop.eup %967 }
 0x193   :  { %153 = vrot.lane.b32.xlu1 %v968_v31, %s1199_s0 }
 0x205   :  { %v154_v32 = vpop.permute.xlu1 %153 }
 0x206   :  { %v156_v33 = vmul.f32 %v154_v32, %v133_v25 }
 0x208   :  { %158 = vrot.lane.b32.xlu2 %v156_v33, %s1200_s2 }
 0x262   :  { %v159_v34 = vpop.permute.xlu2 %158 }
 0x263   :  { %161 = vst.msk [vmem:[#allocation4] sm:$0xff] %vm81_vm0, %v159_v34  ;;  %909 = vmatmul.msk.f32.vlgmr.msra.gmra.mxu1 %vm81_vm0, %v159_v34 }
 0x2e0   :  { %v183_v36 = vpop.f32.mrf.mxu1 }
 0x2e1   :  { %v186_v37 = vadd.f32 %v183_v36, %v163_v35 }
 0x2e3   :  { %969 = vtanh.f32 %v186_v37  ;;  %v910_v39 = vmul.f32 -1.442695, %v186_v37 }
 0x2e5   :  { %971 = vpow2.f32 %v910_v39 }
 0x2e9   :  { %v970_v38 = vpop.eup %969 }
 0x2ea   :  { %209 = vrot.lane.b32.xlu2 %v970_v38, %s1199_s0 }
 0x2eb   :  { %v972_v40 = vpop.eup %971 }
 0x2ec   :  { %v190_v41 = vadd.f32 1.0, %v972_v40 }
 0x2ee   :  { %973 = vrcp.f32 %v190_v41  ;;  %v202_v47 = vand.u32 2147483648, %v190_v41  ;;  %vm196_vm6 = vweird.f32 %v190_v41  ;;  %v200_v48 = vand.u32 2147483647, %v190_v41 }
 0x2f0   :  { %v203_v50 = vor.u32 1.1754944e-38, %v202_v47  ;;  %vm201_vm8 = vcmp.eq.f32.partialorder %v200_v48, 8.507059e+37  ;;  %v655_v48 = vld [vmem:[#allocation11 + $0x18] sm:$0xff] }
 0x2f1   :  { %696 = vmatpush.msra.mxu0 %v655_v48  ;;  %931 = vmatpush.msra.mxu1 %v655_v48 }
 0x2f4   :  { %v974_v42 = vpop.eup %973 }
 0x2f5   :  { %v192_v43 = vmul.f32 %v974_v42, %v190_v41  ;;  %vm197_vm5 = vweird.f32 %v974_v42 }
 0x2f6   :  { %vm198_vm7 = vmor %vm196_vm6, %vm197_vm5 }
 0x2f7   :  { %v193_v44 = vsub.f32 1.0, %v192_v43 }
 0x2f9   :  { %v194_v45 = vmul.f32 %v974_v42, %v193_v44 }
 0x2fb   :  { %v195_v46 = vadd.f32 %v974_v42, %v194_v45 }
 0x2fd   :  { %v199_v49 = vsel %vm198_vm7, %v974_v42, %v195_v46 }
 0x2fe   :  { %v204_v52 = vsel %vm201_vm8, %v203_v50, %v199_v49  ;;  %v654_v49 = vld [vmem:[#allocation11 + $0x10] sm:$0xff]  ;;  %v653_v50 = vld [vmem:[#allocation11 + $0x8] sm:$0xff] }
 0x2ff   :  { %v207_v54 = vmul.f32 %v204_v52, %v150_v30  ;;  %697 = vmatpush.msra.mxu0 %v654_v49  ;;  %934 = vmatpush.msra.mxu1 %v654_v49 }
 0x301   :  { %698 = vmatpush.msra.mxu0 %v653_v50  ;;  %937 = vmatpush.msra.mxu1 %v653_v50 }
 0x344   :  { %v210_v51 = vpop.permute.xlu2 %209 }
 0x345   :  { %v212_v53 = vmul.f32 %v210_v51, %v204_v52  ;;  %v652_v51 = vld [vmem:[#allocation11] sm:$0xff] }
 0x346   :  { %699 = vmatpush.msra.mxu0 %v652_v51  ;;  %940 = vmatpush.msra.mxu1 %v652_v51 }
 0x347   :  { %214 = vrot.lane.b32.xlu0 %v212_v53, %s1200_s2  ;;  %v644_v53 = vld [vmem:[#allocation4] sm:$0xff] }
 0x3b9   :  { %v215_v55 = vpop.permute.xlu0 %214 }
 0x3ba   :  { %v217_v56 = vadd.f32 %v215_v55, %v207_v54  ;;  %v367_v55 = vld [vmem:[#allocation6 + $0x20] sm:$0xff] }
 0x3bc   :  { %975 = vtanh.f32 %v217_v56 }
 0x3c2   :  { %v976_v57 = vpop.eup %975 }
 0x3c3   :  { %220 = vrot.lane.b32.xlu1 %v976_v57, %s1199_s0 }
 0x435   :  { %v221_v58 = vpop.permute.xlu1 %220 }
 0x436   :  { %v223_v59 = vmul.f32 %v221_v58, %v204_v52 }
 0x438   :  { %225 = vrot.lane.b32.xlu2 %v223_v59, %s1200_s2 }
 0x492   :  { %v226_v60 = vpop.permute.xlu2 %225 }
 0x493   :  { %229 = vst.msk [vmem:[#allocation4 + $0x8] sm:$0xff] %vm81_vm0, %v226_v60  ;;  %911 = vmatmul.msk.f32.vlgmr.msra.gmra.mxu2 %vm81_vm0, %v226_v60 }
 0x494   :  { %932 = vmatpush.msra.mxu2 %v655_v48 }
 0x496   :  { %935 = vmatpush.msra.mxu2 %v654_v49 }
 0x498   :  { %938 = vmatpush.msra.mxu2 %v653_v50 }
 0x49a   :  { %941 = vmatpush.msra.mxu2 %v652_v51  ;;  %v645_v54 = vld [vmem:[#allocation4 + $0x8] sm:$0xff] }
 0x516   :  { %v251_v62 = vpop.f32.mrf.mxu2 }
 0x517   :  { %v254_v63 = vadd.f32 %v251_v62, %v231_v61 }
 0x519   :  { %977 = vtanh.f32 %v254_v63  ;;  %v912_v1 = vmul.f32 -1.442695, %v254_v63 }
 0x51b   :  { %979 = vpow2.f32 %v912_v1 }
 0x51f   :  { %v978_v0 = vpop.eup %977 }
 0x520   :  { %277 = vrot.lane.b32.xlu0 %v978_v0, %s1199_s0 }
 0x521   :  { %v980_v2 = vpop.eup %979 }
 0x522   :  { %v258_v3 = vadd.f32 1.0, %v980_v2 }
 0x524   :  { %981 = vrcp.f32 %v258_v3  ;;  %v270_v9 = vand.u32 2147483648, %v258_v3  ;;  %vm264_vm10 = vweird.f32 %v258_v3  ;;  %v268_v10 = vand.u32 2147483647, %v258_v3 }
 0x526   :  { %v271_v12 = vor.u32 1.1754944e-38, %v270_v9  ;;  %vm269_vm12 = vcmp.eq.f32.partialorder %v268_v10, 8.507059e+37 }
 0x52a   :  { %v982_v4 = vpop.eup %981 }
 0x52b   :  { %v260_v5 = vmul.f32 %v982_v4, %v258_v3  ;;  %vm265_vm9 = vweird.f32 %v982_v4 }
 0x52c   :  { %vm266_vm11 = vmor %vm264_vm10, %vm265_vm9 }
 0x52d   :  { %v261_v6 = vsub.f32 1.0, %v260_v5 }
 0x52f   :  { %v262_v7 = vmul.f32 %v982_v4, %v261_v6 }
 0x531   :  { %v263_v8 = vadd.f32 %v982_v4, %v262_v7 }
 0x533   :  { %v267_v11 = vsel %vm266_vm11, %v982_v4, %v263_v8 }
 0x534   :  { %v272_v14 = vsel %vm269_vm12, %v271_v12, %v267_v11 }
 0x535   :  { %v275_v16 = vmul.f32 %v272_v14, %v217_v56 }
 0x592   :  { %v278_v13 = vpop.permute.xlu0 %277 }
 0x593   :  { %v280_v15 = vmul.f32 %v278_v13, %v272_v14 }
 0x595   :  { %282 = vrot.lane.b32.xlu1 %v280_v15, %s1200_s2 }
 0x607   :  { %v283_v17 = vpop.permute.xlu1 %282 }
 0x608   :  { %v285_v18 = vadd.f32 %v283_v17, %v275_v16 }
 0x60a   :  { %983 = vtanh.f32 %v285_v18 }
 0x610   :  { %v984_v19 = vpop.eup %983 }
 0x611   :  { %288 = vrot.lane.b32.xlu2 %v984_v19, %s1199_s0  ;;  %v435_v19 = vld [vmem:[#allocation6 + $0x28] sm:$0xff] }
 0x66b   :  { %v289_v20 = vpop.permute.xlu2 %288 }
 0x66c   :  { %v291_v21 = vmul.f32 %v289_v20, %v272_v14 }
 0x66e   :  { %293 = vrot.lane.b32.xlu0 %v291_v21, %s1200_s2 }
 0x6e0   :  { %v294_v22 = vpop.permute.xlu0 %293 }
 0x6e1   :  { %297 = vst.msk [vmem:[#allocation4 + $0x10] sm:$0xff] %vm81_vm0, %v294_v22  ;;  %913 = vmatmul.msk.f32.vlgmr.msra.gmra.mxu3 %vm81_vm0, %v294_v22 }
 0x6e2   :  { %933 = vmatpush.msra.mxu3 %v655_v48 }
 0x6e4   :  { %936 = vmatpush.msra.mxu3 %v654_v49 }
 0x6e6   :  { %939 = vmatpush.msra.mxu3 %v653_v50 }
 0x6e8   :  { %942 = vmatpush.msra.mxu3 %v652_v51  ;;  %v646_v17 = vld [vmem:[#allocation4 + $0x10] sm:$0xff] }
 0x764   :  { %v319_v24 = vpop.f32.mrf.mxu3 }
 0x765   :  { %v322_v25 = vadd.f32 %v319_v24, %v299_v23 }
 0x767   :  { %985 = vtanh.f32 %v322_v25  ;;  %v914_v27 = vmul.f32 -1.442695, %v322_v25 }
 0x769   :  { %987 = vpow2.f32 %v914_v27 }
 0x76d   :  { %v986_v26 = vpop.eup %985 }
 0x76e   :  { %345 = vrot.lane.b32.xlu1 %v986_v26, %s1199_s0 }
 0x76f   :  { %v988_v28 = vpop.eup %987 }
 0x770   :  { %v326_v29 = vadd.f32 1.0, %v988_v28 }
 0x772   :  { %989 = vrcp.f32 %v326_v29  ;;  %v338_v35 = vand.u32 2147483648, %v326_v29  ;;  %vm332_vm14 = vweird.f32 %v326_v29  ;;  %v336_v36 = vand.u32 2147483647, %v326_v29 }
 0x774   :  { %v339_v38 = vor.u32 1.1754944e-38, %v338_v35  ;;  %vm337_vm1 = vcmp.eq.f32.partialorder %v336_v36, 8.507059e+37 }
 0x778   :  { %v990_v30 = vpop.eup %989 }
 0x779   :  { %v328_v31 = vmul.f32 %v990_v30, %v326_v29  ;;  %vm333_vm13 = vweird.f32 %v990_v30 }
 0x77a   :  { %vm334_vm15 = vmor %vm332_vm14, %vm333_vm13 }
 0x77b   :  { %v329_v32 = vsub.f32 1.0, %v328_v31 }
 0x77d   :  { %v330_v33 = vmul.f32 %v990_v30, %v329_v32 }
 0x77f   :  { %v331_v34 = vadd.f32 %v990_v30, %v330_v33 }
 0x781   :  { %v335_v37 = vsel %vm334_vm15, %v990_v30, %v331_v34 }
 0x782   :  { %v340_v40 = vsel %vm337_vm1, %v339_v38, %v335_v37 }
 0x783   :  { %v343_v42 = vmul.f32 %v340_v40, %v285_v18 }
 0x7e0   :  { %v346_v39 = vpop.permute.xlu1 %345 }
 0x7e1   :  { %v348_v41 = vmul.f32 %v346_v39, %v340_v40 }
 0x7e3   :  { %350 = vrot.lane.b32.xlu2 %v348_v41, %s1200_s2 }
 0x83d   :  { %v351_v43 = vpop.permute.xlu2 %350 }
 0x83e   :  { %v353_v44 = vadd.f32 %v351_v43, %v343_v42 }
 0x840   :  { %991 = vtanh.f32 %v353_v44 }
 0x846   :  { %v992_v45 = vpop.eup %991 }
 0x847   :  { %356 = vrot.lane.b32.xlu0 %v992_v45, %s1199_s0 }
 0x8b9   :  { %v357_v46 = vpop.permute.xlu0 %356 }
 0x8ba   :  { %v359_v47 = vmul.f32 %v357_v46, %v340_v40 }
 0x8bc   :  { %361 = vrot.lane.b32.xlu1 %v359_v47, %s1200_s2  ;;  %v503_v47 = vld [vmem:[#allocation6 + $0x30] sm:$0xff] }
 0x92e   :  { %v362_v52 = vpop.permute.xlu1 %361 }
 0x92f   :  { %365 = vst.msk [vmem:[#allocation4 + $0x18] sm:$0xff] %vm81_vm0, %v362_v52  ;;  %915 = vmatmul.msk.f32.vlgmr.msrb.gmra.mxu0 %vm81_vm0, %v362_v52 }
 0x936   :  { %v647_v18 = vld [vmem:[#allocation4 + $0x18] sm:$0xff] }
 0x937   :  { %923 = vmatmul.msk.f32.vlgmr.msra.gmra.mxu0 %vm81_vm0, %v644_v53 }
 0x93f   :  { %924 = vmatmul.msk.f32.gmra.mxu0 %vm81_vm0, %v645_v54 }
 0x9ac   :  { %v387_v56 = vpop.f32.mrf.mxu0 }
 0x9ad   :  { %v390_v57 = vadd.f32 %v387_v56, %v367_v55 }
 0x9af   :  { %993 = vtanh.f32 %v390_v57  ;;  %v916_v59 = vmul.f32 -1.442695, %v390_v57 }
 0x9b1   :  { %995 = vpow2.f32 %v916_v59 }
 0x9b5   :  { %v994_v58 = vpop.eup %993 }
 0x9b6   :  { %413 = vrot.lane.b32.xlu2 %v994_v58, %s1199_s0 }
 0x9b7   :  { %v996_v60 = vpop.eup %995 }
 0x9b8   :  { %v394_v61 = vadd.f32 1.0, %v996_v60 }
 0x9ba   :  { %997 = vrcp.f32 %v394_v61  ;;  %v406_v3 = vand.u32 2147483648, %v394_v61  ;;  %vm400_vm3 = vweird.f32 %v394_v61  ;;  %v404_v4 = vand.u32 2147483647, %v394_v61 }
 0x9bc   :  { %v407_v6 = vor.u32 1.1754944e-38, %v406_v3  ;;  %vm405_vm5 = vcmp.eq.f32.partialorder %v404_v4, 8.507059e+37 }
 0x9c0   :  { %v998_v62 = vpop.eup %997 }
 0x9c1   :  { %v396_v63 = vmul.f32 %v998_v62, %v394_v61  ;;  %vm401_vm2 = vweird.f32 %v998_v62 }
 0x9c2   :  { %vm402_vm4 = vmor %vm400_vm3, %vm401_vm2  ;;  %vm802_vm3 = vcmask 1041409  }
 0x9c3   :  { %v397_v0 = vsub.f32 1.0, %v396_v63 }
 0x9c5   :  { %v398_v1 = vmul.f32 %v998_v62, %v397_v0 }
 0x9c7   :  { %v399_v2 = vadd.f32 %v998_v62, %v398_v1 }
 0x9c9   :  { %v403_v5 = vsel %vm402_vm4, %v998_v62, %v399_v2  ;;  %vm804_vm4 = vcmask 1042434  }
 0x9ca   :  { %v408_v8 = vsel %vm405_vm5, %v407_v6, %v403_v5  ;;  %vm808_vm5 = vcmask 1044484  }
 0x9cb   :  { %v411_v10 = vmul.f32 %v408_v8, %v353_v44 }
 0xa10   :  { %v414_v7 = vpop.permute.xlu2 %413 }
 0xa11   :  { %v416_v9 = vmul.f32 %v414_v7, %v408_v8 }
 0xa13   :  { %418 = vrot.lane.b32.xlu0 %v416_v9, %s1200_s2 }
 0xa85   :  { %v419_v11 = vpop.permute.xlu0 %418 }
 0xa86   :  { %v421_v12 = vadd.f32 %v419_v11, %v411_v10  ;;  %v571_v10 = vld [vmem:[#allocation6 + $0x38] sm:$0xff] }
 0xa88   :  { %999 = vtanh.f32 %v421_v12 }
 0xa8e   :  { %v1000_v13 = vpop.eup %999 }
 0xa8f   :  { %424 = vrot.lane.b32.xlu1 %v1000_v13, %s1199_s0 }
 0xb01   :  { %v425_v14 = vpop.permute.xlu1 %424 }
 0xb02   :  { %v427_v15 = vmul.f32 %v425_v14, %v408_v8 }
 0xb04   :  { %429 = vrot.lane.b32.xlu2 %v427_v15, %s1200_s2 }
 0xb5e   :  { %v430_v16 = vpop.permute.xlu2 %429 }
 0xb5f   :  { %433 = vst.msk [vmem:[#allocation4 + $0x20] sm:$0xff] %vm81_vm0, %v430_v16  ;;  %917 = vmatmul.msk.f32.vlgmr.msrb.gmra.mxu1 %vm81_vm0, %v430_v16 }
 0xb66   :  { %v648_v45 = vld [vmem:[#allocation4 + $0x20] sm:$0xff] }
 0xb67   :  { %925 = vmatmul.msk.f32.vlgmr.msra.gmra.mxu1 %vm81_vm0, %v646_v17 }
 0xb6f   :  { %926 = vmatmul.msk.f32.gmra.mxu1 %vm81_vm0, %v647_v18 }
 0xbdc   :  { %v455_v20 = vpop.f32.mrf.mxu1 }
 0xbdd   :  { %v458_v21 = vadd.f32 %v455_v20, %v435_v19 }
 0xbdf   :  { %1001 = vtanh.f32 %v458_v21  ;;  %v918_v23 = vmul.f32 -1.442695, %v458_v21 }
 0xbe1   :  { %1003 = vpow2.f32 %v918_v23 }
 0xbe5   :  { %v1002_v22 = vpop.eup %1001 }
 0xbe6   :  { %481 = vrot.lane.b32.xlu0 %v1002_v22, %s1199_s0 }
 0xbe7   :  { %v1004_v24 = vpop.eup %1003 }
 0xbe8   :  { %v462_v25 = vadd.f32 1.0, %v1004_v24 }
 0xbea   :  { %1005 = vrcp.f32 %v462_v25  ;;  %v474_v31 = vand.u32 2147483648, %v462_v25  ;;  %vm468_vm7 = vweird.f32 %v462_v25  ;;  %v472_v32 = vand.u32 2147483647, %v462_v25 }
 0xbec   :  { %v475_v34 = vor.u32 1.1754944e-38, %v474_v31  ;;  %vm473_vm9 = vcmp.eq.f32.partialorder %v472_v32, 8.507059e+37  ;;  %v701_v31 = vpop.f32.mrf.mxu0 }
 0xbf0   :  { %v1006_v26 = vpop.eup %1005 }
 0xbf1   :  { %v464_v27 = vmul.f32 %v1006_v26, %v462_v25  ;;  %vm469_vm6 = vweird.f32 %v1006_v26 }
 0xbf2   :  { %vm470_vm8 = vmor %vm468_vm7, %vm469_vm6  ;;  %vm810_vm6 = vcmask 1045509   ;;  %vm812_vm7 = vcmask 1046534  }
 0xbf3   :  { %v465_v28 = vsub.f32 1.0, %v464_v27 }
 0xbf5   :  { %v466_v29 = vmul.f32 %v1006_v26, %v465_v28 }
 0xbf7   :  { %v467_v30 = vadd.f32 %v1006_v26, %v466_v29  ;;  %v707_v29 = vpop.f32.mrf.mxu1 }
 0xbf9   :  { %v471_v33 = vsel %vm470_vm8, %v1006_v26, %v467_v30  ;;  %v1324_v30 = vld [vmem:[%s1376_s3] ss:$0 sm:$0xff]  ;;  %s1201_s3 = smov 96   ;;  %vm814_vm8 = vcmask 1047559  }
 0xbfa   :  { %v476_v36 = vsel %vm473_vm9, %v475_v34, %v471_v33  ;;  %v702_v32 = vadd.f32 %v1324_v30, %v701_v31  ;;  %vm849_vm9 = vcmask 64512  }
 0xbfb   :  { %v479_v38 = vmul.f32 %v476_v36, %v421_v12 }
 0xbff   :  { %v710_v34 = vpop.f32.mrf.mxu1 }
 0xc58   :  { %v482_v35 = vpop.permute.xlu0 %481 }
 0xc59   :  { %v484_v37 = vmul.f32 %v482_v35, %v476_v36  ;;  %v711_v35 = vadd.f32 %v1324_v30, %v710_v34 }
 0xc5b   :  { %486 = vrot.lane.b32.xlu1 %v484_v37, %s1200_s2 }
 0xccd   :  { %v487_v39 = vpop.permute.xlu1 %486 }
 0xcce   :  { %v489_v40 = vadd.f32 %v487_v39, %v479_v38 }
 0xcd0   :  { %1007 = vtanh.f32 %v489_v40 }
 0xcd6   :  { %v1008_v41 = vpop.eup %1007 }
 0xcd7   :  { %492 = vrot.lane.b32.xlu2 %v1008_v41, %s1199_s0 }
 0xd31   :  { %v493_v42 = vpop.permute.xlu2 %492 }
 0xd32   :  { %v495_v43 = vmul.f32 %v493_v42, %v476_v36  ;;  %v1331_v36 = vld [vmem:[%s1377_s4] ss:$0 sm:$0xff]  ;;  %s1203_s4 = smov [#allocation13]  }
 0xd33   :  { %s874_s26 = sshll.u32 %s1203_s4, 4  ;;  %s875_s26 = int_to_ptr.vmem [resolvable:$true] %s874_s26 }
 0xd34   :  { %497 = vrot.lane.b32.xlu0 %v495_v43, %s1200_s2 }
 0xda6   :  { %v498_v44 = vpop.permute.xlu0 %497 }
 0xda7   :  { %501 = vst.msk [vmem:[#allocation4 + $0x28] sm:$0xff] %vm81_vm0, %v498_v44  ;;  %919 = vmatmul.msk.f32.vlgmr.msrb.gmra.mxu2 %vm81_vm0, %v498_v44 }
 0xdae   :  { %v649_v46 = vld [vmem:[#allocation4 + $0x28] sm:$0xff] }
 0xdaf   :  { %927 = vmatmul.msk.f32.vlgmr.msra.gmra.mxu2 %vm81_vm0, %v648_v45 }
 0xdb7   :  { %928 = vmatmul.msk.f32.gmra.mxu2 %vm81_vm0, %v649_v46 }
 0xe2a   :  { %v523_v48 = vpop.f32.mrf.mxu2 }
 0xe2b   :  { %v526_v49 = vadd.f32 %v523_v48, %v503_v47 }
 0xe2d   :  { %1009 = vtanh.f32 %v526_v49  ;;  %v920_v51 = vmul.f32 -1.442695, %v526_v49 }
 0xe2f   :  { %1011 = vpow2.f32 %v920_v51 }
 0xe32   :  { %v713_v33 = vpop.f32.mrf.mxu2 }
 0xe33   :  { %v1010_v50 = vpop.eup %1009 }
 0xe34   :  { %549 = vrot.lane.b32.xlu1 %v1010_v50, %s1199_s0 }
 0xe35   :  { %v1012_v52 = vpop.eup %1011 }
 0xe36   :  { %v530_v53 = vadd.f32 1.0, %v1012_v52  ;;  %v704_v52 = vpop.f32.mrf.mxu0 }
 0xe38   :  { %1013 = vrcp.f32 %v530_v53  ;;  %v542_v59 = vand.u32 2147483648, %v530_v53  ;;  %vm536_vm11 = vweird.f32 %v530_v53  ;;  %v540_v60 = vand.u32 2147483647, %v530_v53 }
 0xe3a   :  { %v543_v62 = vor.u32 1.1754944e-38, %v542_v59  ;;  %vm541_vm13 = vcmp.eq.f32.partialorder %v540_v60, 8.507059e+37  ;;  %v716_v38 = vpop.f32.mrf.mxu2 }
 0xe3e   :  { %v1014_v54 = vpop.eup %1013 }
 0xe3f   :  { %v532_v55 = vmul.f32 %v1014_v54, %v530_v53  ;;  %vm537_vm10 = vweird.f32 %v1014_v54  ;;  %v705_v53 = vadd.f32 %v1324_v30, %v704_v52 }
 0xe40   :  { %vm538_vm12 = vmor %vm536_vm11, %vm537_vm10 }
 0xe41   :  { %v533_v56 = vsub.f32 1.0, %v532_v55 }
 0xe43   :  { %v534_v57 = vmul.f32 %v1014_v54, %v533_v56 }
 0xe45   :  { %v535_v58 = vadd.f32 %v1014_v54, %v534_v57 }
 0xe47   :  { %v539_v61 = vsel %vm538_vm12, %v1014_v54, %v535_v58  ;;  %v714_v54 = vadd.f32 %v1324_v30, %v713_v33 }
 0xe48   :  { %v544_v0 = vsel %vm541_vm13, %v543_v62, %v539_v61 }
 0xe49   :  { %v547_v2 = vmul.f32 %v544_v0, %v489_v40  ;;  %v717_v40 = vadd.f32 %v1324_v30, %v716_v38 }
 0xea6   :  { %v550_v63 = vpop.permute.xlu1 %549 }
 0xea7   :  { %v552_v1 = vmul.f32 %v550_v63, %v544_v0 }
 0xea9   :  { %554 = vrot.lane.b32.xlu2 %v552_v1, %s1200_s2 }
 0xf03   :  { %v555_v3 = vpop.permute.xlu2 %554 }
 0xf04   :  { %v1311_v4 = vadd.f32 %v555_v3, %v547_v2 }
 0xf06   :  { %1015 = vtanh.f32 %v1311_v4 }
 0xf0c   :  { %v1016_v5 = vpop.eup %1015 }
 0xf0d   :  { %560 = vrot.lane.b32.xlu0 %v1016_v5, %s1199_s0  ;;  %v1202_v5 = vmov 0  }
 0xf0e   :  { %956 = vset.pattern.permute.xlu2 %v1202_v5  ;;  %957 = vset.pattern.permute.xlu0 %v1202_v5 }
 0xf7f   :  { %v561_v6 = vpop.permute.xlu0 %560 }
 0xf80   :  { %v563_v7 = vmul.f32 %v561_v6, %v544_v0 }
 0xf82   :  { %565 = vrot.lane.b32.xlu1 %v563_v7, %s1200_s2 }
 0xff4   :  { %v566_v8 = vpop.permute.xlu1 %565 }
 0xff5   :  { %569 = vst.msk [vmem:[#allocation4 + $0x30] sm:$0xff] %vm81_vm0, %v566_v8  ;;  %921 = vmatmul.msk.f32.vlgmr.msrb.gmra.mxu3 %vm81_vm0, %v566_v8 }
 0xffc   :  { %v650_v9 = vld [vmem:[#allocation4 + $0x30] sm:$0xff] }
 0xffd   :  { %929 = vmatmul.msk.f32.vlgmr.msra.gmra.mxu3 %vm81_vm0, %v650_v9 }
0x1078   :  { %v591_v11 = vpop.f32.mrf.mxu3 }
0x1079   :  { %v594_v12 = vadd.f32 %v591_v11, %v571_v10  ;;  %v960_v10 = vld [vmem:[#allocation5] ss:$0 sm:$0xff] }
0x107b   :  { %1017 = vtanh.f32 %v594_v12  ;;  %v922_v14 = vmul.f32 -1.442695, %v594_v12 }
0x107d   :  { %1019 = vpow2.f32 %v922_v14 }
0x1080   :  { %v719_v56 = vpop.f32.mrf.mxu3 }
0x1081   :  { %v1018_v13 = vpop.eup %1017  ;;  %v720_v58 = vadd.f32 %v1324_v30, %v719_v56 }
0x1082   :  { %617 = vrot.lane.b32.xlu2 %v1018_v13, %s1199_s0 }
0x1083   :  { %v1020_v15 = vpop.eup %1019 }
0x1084   :  { %v598_v16 = vadd.f32 1.0, %v1020_v15 }
0x1086   :  { %1021 = vrcp.f32 %v598_v16  ;;  %v610_v22 = vand.u32 2147483648, %v598_v16  ;;  %vm604_vm15 = vweird.f32 %v598_v16  ;;  %v608_v23 = vand.u32 2147483647, %v598_v16 }
0x1087   :  { %1023 = vtanh.f32 %v702_v32 }
0x1088   :  { %v611_v25 = vor.u32 1.1754944e-38, %v610_v22  ;;  %vm609_vm2 = vcmp.eq.f32.partialorder %v608_v23, 8.507059e+37  ;;  %1025 = vtanh.f32 %v711_v35 }
0x1089   :  { %1027 = vtanh.f32 %v717_v40 }
0x108c   :  { %v1022_v17 = vpop.eup %1021 }
0x108d   :  { %v600_v18 = vmul.f32 %v1022_v17, %v598_v16  ;;  %vm605_vm14 = vweird.f32 %v1022_v17  ;;  %v1024_v37 = vpop.eup %1023 }
0x108e   :  { %vm606_vm1 = vmor %vm604_vm15, %vm605_vm14  ;;  %v737_v39 = vmul.f32 %v1024_v37, %v1331_v36  ;;  %v1026_v42 = vpop.eup %1025 }
0x108f   :  { %v601_v19 = vsub.f32 1.0, %v600_v18  ;;  %v740_v43 = vmul.f32 %v1026_v42, %v1331_v36  ;;  %v1028_v45 = vpop.eup %1027 }
0x1090   :  { %v745_v41 = vsel %vm81_vm0, %v737_v39, 0.0  ;;  %v742_v46 = vmul.f32 %v1028_v45, %v1331_v36 }
0x1091   :  { %v602_v20 = vmul.f32 %v1022_v17, %v601_v19  ;;  %v754_v44 = vsel %vm81_vm0, %v740_v43, 0.0 }
0x1092   :  { %v760_v47 = vsel %vm81_vm0, %v742_v46, 0.0 }
0x1093   :  { %v603_v21 = vadd.f32 %v1022_v17, %v602_v20 }
0x1095   :  { %v607_v24 = vsel %vm606_vm1, %v1022_v17, %v603_v21 }
0x1096   :  { %v612_v27 = vsel %vm609_vm2, %v611_v25, %v607_v24  ;;  %v792_v25 = vlaneseq }
0x1097   :  { %v615_v48 = vmul.f32 %v612_v27, %v1311_v4  ;;  %v708_v4 = vadd.f32 %v1324_v30, %v707_v29 }
0x1098   :  { %v793_v29 = vand.u32 127, %v792_v25 }
0x10dc   :  { %v618_v26 = vpop.permute.xlu2 %617 }
0x10dd   :  { %v620_v28 = vmul.f32 %v618_v26, %v612_v27 }
0x10df   :  { %622 = vrot.lane.b32.xlu0 %v620_v28, %s1200_s2 }
0x1109   :  { %746 = vadd.xlane.f32.xlu0 %v745_v41 }
0x1111   :  { %755 = vadd.xlane.f32.xlu0 %v754_v44 }
0x1119   :  { %761 = vadd.xlane.f32.xlu0 %v760_v47 }
0x1151   :  { %v623_v49 = vpop.permute.xlu0 %622 }
0x1152   :  { %v625_v50 = vadd.f32 %v623_v49, %v615_v48 }
0x1154   :  { %1029 = vtanh.f32 %v625_v50 }
0x1155   :  { %1031 = vtanh.f32 %v705_v53 }
0x1156   :  { %1033 = vtanh.f32 %v714_v54 }
0x1157   :  { %1035 = vtanh.f32 %v720_v58 }
0x1158   :  { %1037 = vtanh.f32 %v708_v4 }
0x115a   :  { %v1030_v51 = vpop.eup %1029 }
0x115b   :  { %628 = vrot.lane.b32.xlu1 %v1030_v51, %s1199_s0  ;;  %v1032_v55 = vpop.eup %1031 }
0x115c   :  { %v738_v57 = vmul.f32 %v1032_v55, %v1331_v36  ;;  %v1034_v60 = vpop.eup %1033 }
0x115d   :  { %v741_v61 = vmul.f32 %v1034_v60, %v1331_v36  ;;  %v1036_v63 = vpop.eup %1035 }
0x115e   :  { %v748_v59 = vsel %vm81_vm0, %v738_v57, 0.0  ;;  %v743_v0 = vmul.f32 %v1036_v63, %v1331_v36  ;;  %v1038_v6 = vpop.eup %1037 }
0x115f   :  { %v757_v62 = vsel %vm81_vm0, %v741_v61, 0.0  ;;  %v739_v7 = vmul.f32 %v1038_v6, %v1331_v36 }
0x1160   :  { %v763_v1 = vsel %vm81_vm0, %v743_v0, 0.0 }
0x1161   :  { %v751_v8 = vsel %vm81_vm0, %v739_v7, 0.0 }
0x117c   :  { %v747_v24 = vpop.xlane.xlu0 %746 }
0x1184   :  { %v756_v31 = vpop.xlane.xlu0 %755 }
0x1185   :  { %749 = vadd.xlane.f32.xlu1 %v748_v59 }
0x118d   :  { %758 = vadd.xlane.f32.xlu1 %v757_v62 }
0x1195   :  { %764 = vadd.xlane.f32.xlu1 %v763_v1 }
0x11ae   :  { %640 = vrot.lane.b32.xlu1 %v625_v50, %s1201_s3 }
0x11cd   :  { %v629_v2 = vpop.permute.xlu1 %628 }
0x11ce   :  { %v631_v3 = vmul.f32 %v629_v2, %v612_v27 }
0x11d0   :  { %633 = vrot.lane.b32.xlu2 %v631_v3, %s1200_s2 }
0x11f8   :  { %v750_v9 = vpop.xlane.xlu1 %749 }
0x11f9   :  { %752 = vadd.xlane.f32.xlu2 %v751_v8 }
0x1200   :  { %v759_v11 = vpop.xlane.xlu1 %758 }
0x1208   :  { %v765_v12 = vpop.xlane.xlu1 %764 }
0x1211   :  { %773 = vperm.xlu2 %956, %v960_v10  }
0x1220   :  { %v641_v13 = vpop.permute.xlu1 %640 }
0x1221   :  { %643 = vst.msk [vmem:[#allocation3] sm:$0xff] %vm81_vm0, %v641_v13 }
0x1228   :  { %v856_v14 = vld [vmem:[#allocation3] sm:$0xff] }
0x1229   :  { %857 = vst.msk [vmem:[#allocation15] sm:$0xff] %vm81_vm0, %v856_v14 }
0x122a   :  { %v634_v15 = vpop.permute.xlu2 %633 }
0x122b   :  { %637 = vst.msk [vmem:[#allocation4 + $0x38] sm:$0xff] %vm81_vm0, %v634_v15 }
0x122c   :  { %638 = vst.msk [vmem:[#allocation2] sm:$0xff] %vm81_vm0, %v634_v15 }
0x1232   :  { %v651_v16 = vld [vmem:[#allocation4 + $0x38] sm:$0xff] }
0x1233   :  { %930 = vmatmul.msk.f32.gmra.mxu3 %vm81_vm0, %v651_v16  ;;  %v854_v17 = vld [vmem:[#allocation2] sm:$0xff] }
0x1234   :  { %855 = vst.msk [vmem:[#allocation13] sm:$0xff] %vm81_vm0, %v854_v17 }
0x1235   :  { %879 = dma.vmem_to_hbm [thread:$0]  %s875_s26, 128, %s877_s29, [#allocation14]  }
0x1236   :  { %890 = dma.vmem_to_hbm [thread:$0]  %s886_s9, 128, %s888_s12, [#allocation14]  }
0x126c   :  { %v753_v23 = vpop.xlane.xlu2 %752 }
0x1274   :  { %v774_v26 = vpop.permute.xlu2 %773 }
0x1275   :  { %v776_v27 = vadd.f32 %v774_v26, %v747_v24  ;;  %v777_v28 = vadd.f32 %v774_v26, %v750_v9  ;;  %v778_v32 = vadd.f32 %v774_v26, %v753_v23  ;;  %v779_v35 = vadd.f32 %v774_v26, %v756_v31 }
0x1276   :  { %v780_v38 = vadd.f32 %v774_v26, %v759_v11  ;;  %v782_v44 = vadd.f32 %v774_v26, %v765_v12 }
0x1277   :  { %v794_v33 = vperm.slane %v776_v27, %v793_v29  ;;  %v795_v34 = vperm.slane %v777_v28, %v793_v29  ;;  %v797_v40 = vperm.slane %v779_v35, %v793_v29 }
0x1278   :  { %v798_v43 = vperm.slane %v780_v38, %v793_v29  ;;  %v800_v50 = vperm.slane %v782_v44, %v793_v29 }
0x1279   :  { %v803_v37 = vsel %vm802_vm3, %v795_v34, %v794_v33 }
0x12b6   :  { %v722_v18 = vpop.f32.mrf.mxu3 }
0x12b7   :  { %v723_v19 = vadd.f32 %v1324_v30, %v722_v18  ;;  %v796_v30 = vperm.slane %v778_v32, %v793_v29 }
0x12b9   :  { %1039 = vtanh.f32 %v723_v19  ;;  %v805_v39 = vsel %vm804_vm4, %v796_v30, %v803_v37 }
0x12bf   :  { %v1040_v20 = vpop.eup %1039 }
0x12c0   :  { %v744_v21 = vmul.f32 %v1040_v20, %v1331_v36  ;;  %v762_v36 = vpop.xlane.xlu0 %761 }
0x12c1   :  { %v781_v41 = vadd.f32 %v774_v26, %v762_v36 }
0x12c2   :  { %v766_v22 = vsel %vm81_vm0, %v744_v21, 0.0  ;;  %vm806_vm0 = vcmask 1043459  }
0x12c3   :  { %767 = vadd.xlane.f32.xlu0 %v766_v22  ;;  %v807_v42 = vsel %vm806_vm0, %v797_v40, %v805_v39  ;;  %v799_v46 = vperm.slane %v781_v41, %v793_v29 }
0x12c4   :  { %v809_v45 = vsel %vm808_vm5, %v798_v43, %v807_v42 }
0x12c5   :  { %v811_v49 = vsel %vm810_vm6, %v799_v46, %v809_v45 }
0x12c6   :  { %v813_v52 = vsel %vm812_vm7, %v800_v50, %v811_v49 }
0x1336   :  { %v768_v47 = vpop.xlane.xlu0 %767 }
0x1337   :  { %v783_v48 = vadd.f32 %v774_v26, %v768_v47 }
0x1339   :  { %v801_v51 = vperm.slane %v783_v48, %v793_v29 }
0x133b   :  { %v815_v53 = vsel %vm814_vm8, %v801_v51, %v813_v52 }
0x133c   :  { %817 = vxpose.xlu2.b32.start.end [1/1] (short) (narrow) %v815_v53, 8 }
0x13d5   :  { %v833_v54 = vpop.trf.xlu2 }
0x13d6   :  { %850 = vst.msk [vmem:[#allocation12] sm:$0xff] %vm849_vm9, %v833_v54 }
0x13d7   :  { %868 = dma.vmem_to_hbm [thread:$0]  %s864_s14, 128, %s866_s5, [#allocation8]  }
0x13d8   :  { %1189 = dma.done.wait [#allocation8], 128  }
0x13d9   :  { %1190 = vsyncadd [#allocation8], 4294967168 }
0x13da   :  { %1191 = dma.done.wait [#allocation14], 256  }
0x13db   :  { %1192 = vsyncadd [#allocation14], 4294967040 }
0x13dc   :  { %903 = vsyncpa [#allocation7], 1 }
0x13dd   :  { %904 = vsyncpa [#allocation10], 1 }
0x13de   :  { %905 = vsyncpa [#allocation8], 1 }
0x13df   :  { %906 = vsyncpa [#allocation14], 1 }

</bundles_post_ra>
